<compile_context>
chip_gen: v6e
topology: v6e:2x2x1
jax: 0.10.0
libtpu: 0.0.40
codegen_flags: <defaults>
</compile_context>

<pallas_src>
import jax
import jax.numpy as jnp
from jax.experimental import pallas as pl
from jax.experimental.pallas import tpu as pltpu

BN_EPS = 1e-5
LANE = 128
SUBLANE = 8


def _round_up(x, m):
    return (x + m - 1) // m * m


def _pad_axis(a, axis, target):
    pad = target - a.shape[axis]
    if pad <= 0:
        return a
    widths = [(0, 0)] * a.ndim
    widths[axis] = (0, pad)
    return jnp.pad(a, widths)


def _batchnorm(z, gamma, beta):
    """BatchNorm1d, training mode (batch stats, biased variance), folded into one
    per-channel scale + shift.  Sums are centered on row 0 (variance is
    shift-invariant) to avoid E[x^2]-E[x]^2 cancellation at large N."""
    inv_n = 1.0 / z.shape[0]
    c = z[0:1, :]                           # cheap per-channel centering shift
    zc = z - c
    s1 = jnp.sum(zc, axis=0, keepdims=True)
    s2 = jnp.sum(zc * zc, axis=0, keepdims=True)
    mc = s1 * inv_n
    var = jnp.maximum(s2 * inv_n - mc * mc, 0.0)
    mean = c + mc
    scale = gamma * jax.lax.rsqrt(var + BN_EPS)
    shift = beta - mean * scale
    return z * scale + shift


def gnn_kernel(x_ref, a_ref, we_ref, be_ref, eps_ref,
               w1_ref, w2_ref, bn_ref, wo_ref, bo_ref,
               out_ref, h_ref):
    l = pl.program_id(0)
    num_layers = pl.num_programs(0)
    hp = h_ref.shape[-1]

    # Layer 0: run the node encoder to initialize the carried embedding h.
    @pl.when(l == 0)
    def _():
        h_ref[...] = (
            jnp.dot(x_ref[...], we_ref[...], preferred_element_type=jnp.float32)
            + be_ref[...])

    h = h_ref[...]                          # f32 [N, Hp]
    one_plus_eps = 1.0 + eps_ref[l]         # scalar from SMEM, read once per layer

    # Per-layer BN affine params, packed as rows of one (8, 2Hp) tile.
    bn = bn_ref[0]                          # f32 [8, 2Hp]
    g1, bt1 = bn[0:1, :], bn[1:2, :]        # BN(2H) gamma / beta
    gl, btl = bn[2:3, :hp], bn[3:4, :hp]    # outer BN(H) gamma / beta

    # GINConv aggregation: (1 + eps) * h_i + sum_{j->i} h_j  ==  (1+eps)*h + A @ h
    agg = jnp.dot(a_ref[...], h.astype(jnp.bfloat16),
                  preferred_element_type=jnp.float32)
    z = one_plus_eps * h + agg

    # GIN internal MLP: Linear(H->2H) -> BatchNorm1d(2H) -> ReLU -> Linear(2H->H).
    # Linear biases are dropped: a per-channel constant added immediately before a
    # training-mode BatchNorm is removed exactly by the batch-mean subtraction.
    z = jnp.dot(z.astype(jnp.bfloat16), w1_ref[0],
                preferred_element_type=jnp.float32)
    z = _batchnorm(z, g1, bt1)
    z = jnp.maximum(z, 0.0)
    z = jnp.dot(z.astype(jnp.bfloat16), w2_ref[0],
                preferred_element_type=jnp.float32)

    # outer BatchNorm1d(H) -> ReLU -> residual, written straight into the carry.
    z = _batchnorm(z, gl, btl)
    z = jnp.maximum(z, 0.0)
    h_ref[...] = z + h

    # Last layer: lane-dense output head (padded width; wrapper slices real cols).
    @pl.when(l == num_layers - 1)
    def _():
        out_ref[...] = (
            jnp.dot(h_ref[...].astype(jnp.bfloat16), wo_ref[...],
                    preferred_element_type=jnp.float32)
            + bo_ref[...])


def center_scorer_gnn(x, adj, params):
    """x: [N, F] f32 node features; adj: [N, N] dense adjacency (A[dst, src]).
    Returns [N, out_channels] f32 node logits."""
    n, f = x.shape
    hidden = params["we"].shape[-1]
    num_layers = params["w1"].shape[0]
    out_channels = params["wo"].shape[-1]

    hp = _round_up(hidden, LANE)   # rounds 128<hidden<=256 -> 256 (MXU-native on v6e/v7x)
    h2p = 2 * hp
    outp = _round_up(out_channels, LANE)

    to_bf16 = lambda a: a.astype(jnp.bfloat16)
    # bf16 adjacency is exact for integer edge multiplicities <= 256.
    # TODO(synk): host-side validation of pathological multigraph multiplicities.
    x_b = to_bf16(x)
    adj_b = to_bf16(adj)
    we = to_bf16(_pad_axis(params["we"], 1, hp))
    be = _pad_axis(params["be"], 1, hp)
    w1 = to_bf16(_pad_axis(_pad_axis(params["w1"], 1, hp), 2, h2p))
    w2 = to_bf16(_pad_axis(_pad_axis(params["w2"], 1, h2p), 2, hp))
    wo = to_bf16(_pad_axis(_pad_axis(params["wo"], 0, hp), 1, outp))
    bo = _pad_axis(params["bo"], 1, outp)
    eps = params["eps"]

    # Pack the four per-layer BN vectors into one (L, 8, 2Hp) block -> one DMA and
    # one double-buffer per grid step instead of four tiny (1,1,C) blocks.
    bn_pack = jnp.zeros((num_layers, SUBLANE, h2p), jnp.float32)
    bn_pack = bn_pack.at[:, 0, :params["g1"].shape[-1]].set(params["g1"][:, 0, :])
    bn_pack = bn_pack.at[:, 1, :params["bt1"].shape[-1]].set(params["bt1"][:, 0, :])
    bn_pack = bn_pack.at[:, 2, :params["gl"].shape[-1]].set(params["gl"][:, 0, :])
    bn_pack = bn_pack.at[:, 3, :params["btl"].shape[-1]].set(params["btl"][:, 0, :])

    args = (x_b, adj_b, we, be, eps, w1, w2, bn_pack, wo, bo)

    # Generation-aware VMEM cap: ~85% of physical (=> ~56 MiB v7x, ~108 MiB v5e/v6e).
    try:
        phys = getattr(pltpu.get_tpu_info(), "vmem_capacity_bytes", 64 << 20)
    except Exception:  # pragma: no cover - conservative fallback
        phys = 64 << 20
    cap = int(phys * 0.85)

    flops = (2 * n * f * hp
             + num_layers * (2 * n * n * hp + 4 * n * hp * h2p)
             + 2 * n * hp * outp)
    bytes_accessed = int(sum(a.size * a.dtype.itemsize for a in args) + 4 * n * outp)
    cost = pl.CostEstimate(flops=int(flops),
                           transcendentals=int(num_layers * (h2p + hp)),
                           bytes_accessed=bytes_accessed)

    def blk_bytes(shape, dtype, nbuf):
        s = list(shape)
        s[-1] = _round_up(s[-1], LANE)
        if len(s) >= 2:
            s[-2] = _round_up(s[-2], SUBLANE)
        size = 1
        for d in s:
            size *= d
        return nbuf * size * jnp.dtype(dtype).itemsize

    def _call(single_buffer_consts):
        # Constant-index blocks: single-buffered (they never change across layers),
        # so the (N,N) adjacency etc. is resident ONCE instead of twice.
        pm = {"pipeline_mode": pl.Buffered(1)} if single_buffer_consts else {}
        const2 = lambda shape: pl.BlockSpec(shape, lambda l: (0, 0), **pm)
        # Per-layer streamed blocks: default double-buffered prefetch of next layer.
        layer3 = lambda shape: pl.BlockSpec(shape, lambda l: (l, 0, 0))

        in_specs = [
            const2((n, f)),                                     # x (bf16)
            const2((n, n)),                                     # adjacency (bf16)
            const2((f, hp)),                                    # encoder W
            const2((1, hp)),                                    # encoder b
            pl.BlockSpec(memory_space=pltpu.MemorySpace.SMEM),  # eps[l] scalars
            layer3((1, hp, h2p)),                               # W1 (streamed)
            layer3((1, h2p, hp)),                               # W2 (streamed)
            layer3((1, SUBLANE, h2p)),                          # packed BN params
            const2((hp, outp)),                                 # output W (lane-padded)
            const2((1, outp)),                                  # output b
        ]
        out_spec = pl.BlockSpec((n, outp), lambda l: (0, 0), **pm)

        # VMEM residency from the actual block shapes x buffer counts + f32 temps.
        nbc = 1 if single_buffer_consts else 2
        resident = (
            blk_bytes((n, f), jnp.bfloat16, nbc) +
            blk_bytes((n, n), jnp.bfloat16, nbc) +
            blk_bytes((f, hp), jnp.bfloat16, nbc) +
            blk_bytes((1, hp), jnp.float32, nbc) +
            blk_bytes((1, hp, h2p), jnp.bfloat16, 2) +
            blk_bytes((1, h2p, hp), jnp.bfloat16, 2) +
            blk_bytes((1, SUBLANE, h2p), jnp.float32, 2) +
            blk_bytes((hp, outp), jnp.bfloat16, nbc) +
            blk_bytes((1, outp), jnp.float32, nbc) +
            blk_bytes((n, outp), jnp.float32, nbc) +        # output block
            blk_bytes((n, hp), jnp.float32, 1) +            # carried h scratch
            4 * blk_bytes((n, h2p), jnp.float32, 1) +       # f32 working temps
            2 * blk_bytes((n, hp), jnp.float32, 1))
        vmem_limit = int(min(max(resident + (4 << 20), 16 << 20), cap))

        return pl.pallas_call(
            gnn_kernel,
            out_shape=jax.ShapeDtypeStruct((n, outp), jnp.float32),
            grid=(num_layers,),
            in_specs=in_specs,
            out_specs=out_spec,
            scratch_shapes=[pltpu.VMEM((n, hp), jnp.float32)],  # carried embedding h
            compiler_params=pltpu.CompilerParams(
                dimension_semantics=("arbitrary",),
                vmem_limit_bytes=vmem_limit),
            cost_estimate=cost,
        )(*args)

    try:
        out_padded = _call(True)
    except Exception:
        # pipeline_mode=pl.Buffered(1) unsupported on this jax build: fall back to
        # default double-buffering (correct, just more VMEM-hungry).
        out_padded = _call(False)

    return out_padded[:, :out_channels]


# ----------------------------- reference & init -----------------------------

def _batchnorm_ref(z, gamma, beta):
    mean = jnp.mean(z, axis=0, keepdims=True)
    var = jnp.mean((z - mean) ** 2, axis=0, keepdims=True)
    return gamma * (z - mean) * jax.lax.rsqrt(var + BN_EPS) + beta


def reference_forward(x, adj, params):
    """Pure-JAX f32 reference matching the PyTorch module (GIN, train-mode BN)."""
    h = x @ params["we"] + params["be"]
    for l in range(params["w1"].shape[0]):
        h_res = h
        z = (1.0 + params["eps"][l]) * h + adj @ h
        z = z @ params["w1"][l] + params["b1"][l]
        z = jnp.maximum(_batchnorm_ref(z, params["g1"][l], params["bt1"][l]), 0.0)
        z = z @ params["w2"][l] + params["b2"][l]
        z = jnp.maximum(_batchnorm_ref(z, params["gl"][l], params["btl"][l]), 0.0)
        h = z + h_res
    return h @ params["wo"] + params["bo"]


def init_params(key, num_node_features, hidden_channels, num_layers, out_channels=1):
    """Deterministic synthetic init (PyTorch-Linear-style uniform bounds).
    Weights stored pre-transposed as [fan_in, fan_out] so the kernel does x @ W."""
    def lin(k, fan_in, fan_out):
        bound = 1.0 / (fan_in ** 0.5)
        kw, kb = jax.random.split(k)
        w = jax.random.uniform(kw, (fan_in, fan_out), jnp.float32, -bound, bound)
        b = jax.random.uniform(kb, (1, fan_out), jnp.float32, -bound, bound)
        return w, b

    keys = jax.random.split(key, 2 + num_layers)
    we, be = lin(keys[0], num_node_features, hidden_channels)
    wo, bo = lin(keys[1], hidden_channels, out_channels)

    w1s, b1s, w2s, b2s = [], [], [], []
    for l in range(num_layers):
        k1, k2 = jax.random.split(keys[2 + l])
        w1, b1 = lin(k1, hidden_channels, 2 * hidden_channels)
        w2, b2 = lin(k2, 2 * hidden_channels, hidden_channels)
        w1s.append(w1); b1s.append(b1); w2s.append(w2); b2s.append(b2)

    # b1/b2 are kept for the reference; the kernel drops them (cancelled exactly by
    # the training-mode BatchNorm that immediately follows each Linear).
    params = {
        "we": we, "be": be,
        "wo": wo, "bo": bo,
        "eps": jnp.zeros((num_layers,), jnp.float32),  # GINConv eps init = 0
        "w1": jnp.stack(w1s), "b1": jnp.stack(b1s),
        "w2": jnp.stack(w2s), "b2": jnp.stack(b2s),
        # BatchNorm affine params: gamma=1, beta=0 (PyTorch default init)
        "g1": jnp.ones((num_layers, 1, 2 * hidden_channels), jnp.float32),
        "bt1": jnp.zeros((num_layers, 1, 2 * hidden_channels), jnp.float32),
        "gl": jnp.ones((num_layers, 1, hidden_channels), jnp.float32),
        "btl": jnp.zeros((num_layers, 1, hidden_channels), jnp.float32),
    }
    return params


if __name__ == "__main__":
    # Small synthetic graph: 32 nodes, 8 input features, 64 directed edges.
    NUM_NODES = 32
    NUM_FEATURES = 8
    HIDDEN = 32
    NUM_LAYERS = 2
    NUM_EDGES = 64
    OUT_CHANNELS = 1

    key = jax.random.PRNGKey(0)
    kx, ke, kp = jax.random.split(key, 3)

    x = jax.random.normal(kx, (NUM_NODES, NUM_FEATURES), jnp.float32)

    # edge_index: row 0 = src, row 1 = dst (PyG convention)
    edge_index = jax.random.randint(ke, (2, NUM_EDGES), 0, NUM_NODES, jnp.int32)
    src, dst = edge_index[0], edge_index[1]
    # Dense adjacency so scatter-add aggregation becomes a matmul in the kernel.
    adj = jnp.zeros((NUM_NODES, NUM_NODES), jnp.float32).at[dst, src].add(1.0)

    params = init_params(kp, NUM_FEATURES, HIDDEN, NUM_LAYERS, OUT_CHANNELS)

    logits = center_scorer_gnn(x, adj, params)
    jax.block_until_ready(logits)

    ref = reference_forward(x, adj, params)
    max_err = float(jnp.max(jnp.abs(logits - ref)))
    tol = 5e-2 * (1.0 + float(jnp.max(jnp.abs(ref))))

    assert logits.shape == (NUM_NODES, OUT_CHANNELS)
    assert logits.dtype == jnp.float32
    assert bool(jnp.all(jnp.isfinite(logits)))
    assert max_err < tol, f"kernel vs f32 reference mismatch: {max_err} >= {tol}"
    print("KERNEL_OK")
</pallas_src>

<mosaic_0001>
module attributes {stable_mosaic.version = 11 : i64} {
  func.func @gnn_kernel(%arg0: i32, %arg1: memref<32x8xbf16, #tpu.memory_space<vmem>>, %arg2: memref<32x32xbf16, #tpu.memory_space<vmem>>, %arg3: memref<8x128xbf16, #tpu.memory_space<vmem>>, %arg4: memref<1x128xf32, #tpu.memory_space<vmem>>, %arg5: memref<2xf32, #tpu.memory_space<smem>>, %arg6: memref<1x128x256xbf16, #tpu.memory_space<vmem>>, %arg7: memref<1x256x128xbf16, #tpu.memory_space<vmem>>, %arg8: memref<1x8x256xf32, #tpu.memory_space<vmem>>, %arg9: memref<128x128xbf16, #tpu.memory_space<vmem>>, %arg10: memref<1x128xf32, #tpu.memory_space<vmem>>, %arg11: memref<32x128xf32, #tpu.memory_space<vmem>>, %arg12: memref<32x128xf32, #tpu.memory_space<vmem>>) attributes {dimension_semantics = [#tpu.dimension_semantics<arbitrary>], iteration_bounds = array<i64: 2>, scalar_prefetch = 0 : i64, scratch_operands = 1 : i64, tpu.core_type = #tpu.core_type<tc>, window_params = [{pipeline_mode = #tpu.pipeline_mode<synchronous>, transform_indices = @transform_0, window_bounds = array<i64: 32, 8>}, {pipeline_mode = #tpu.pipeline_mode<synchronous>, transform_indices = @transform_1, window_bounds = array<i64: 32, 32>}, {pipeline_mode = #tpu.pipeline_mode<synchronous>, transform_indices = @transform_2, window_bounds = array<i64: 8, 128>}, {pipeline_mode = #tpu.pipeline_mode<synchronous>, transform_indices = @transform_3, window_bounds = array<i64: 1, 128>}, {transform_indices = @transform_4, window_bounds = array<i64: 2>}, {transform_indices = @transform_5, window_bounds = array<i64: 1, 128, 256>}, {transform_indices = @transform_6, window_bounds = array<i64: 1, 256, 128>}, {transform_indices = @transform_7, window_bounds = array<i64: 1, 8, 256>}, {pipeline_mode = #tpu.pipeline_mode<synchronous>, transform_indices = @transform_8, window_bounds = array<i64: 128, 128>}, {pipeline_mode = #tpu.pipeline_mode<synchronous>, transform_indices = @transform_9, window_bounds = array<i64: 1, 128>}, {pipeline_mode = #tpu.pipeline_mode<synchronous>, transform_indices = @transform_10, window_bounds = array<i64: 32, 128>}]} {
    %c0_i32 = arith.constant 0 : i32
    %0 = arith.cmpi eq, %arg0, %c0_i32 : i32
    %1 = arith.extui %0 : i1 to i32
    %c0_i32_0 = arith.constant 0 : i32
    %2 = arith.cmpi ne, %1, %c0_i32_0 : i32
    scf.if %2 {
      %c0_33 = arith.constant 0 : index
      %c0_34 = arith.constant 0 : index
      %90 = vector.load %arg1[%c0_33, %c0_34] : memref<32x8xbf16, #tpu.memory_space<vmem>>, vector<32x8xbf16>
      %c0_35 = arith.constant 0 : index
      %c0_36 = arith.constant 0 : index
      %91 = vector.load %arg3[%c0_35, %c0_36] : memref<8x128xbf16, #tpu.memory_space<vmem>>, vector<8x128xbf16>
      %cst_37 = arith.constant dense<0.000000e+00> : vector<32x128xf32>
      %92 = tpu.matmul %90, %91, %cst_37 {dimension_numbers = #tpu.dot_dimension_numbers<[1], [0], [0], [1], [0, 0, 1, 1], [], []>} : vector<32x8xbf16>, vector<8x128xbf16>, vector<32x128xf32> -> vector<32x128xf32>
      %c0_38 = arith.constant 0 : index
      %c0_39 = arith.constant 0 : index
      %93 = vector.load %arg4[%c0_38, %c0_39] : memref<1x128xf32, #tpu.memory_space<vmem>>, vector<1x128xf32>
      %94 = vector.broadcast %93 : vector<1x128xf32> to vector<32x128xf32>
      %95 = arith.addf %92, %94 : vector<32x128xf32>
      %c0_40 = arith.constant 0 : index
      %c0_41 = arith.constant 0 : index
      %96 = vector.load %arg12[%c0_40, %c0_41] : memref<32x128xf32, #tpu.memory_space<vmem>>, vector<32x128xf32>
      tpu.vector_store %arg12[%c0_40, %c0_41], %95 {strides = array<i32>} : memref<32x128xf32, #tpu.memory_space<vmem>>, vector<32x128xf32>,
    } else {
    }
    %c0 = arith.constant 0 : index
    %c0_1 = arith.constant 0 : index
    %3 = vector.load %arg12[%c0, %c0_1] : memref<32x128xf32, #tpu.memory_space<vmem>>, vector<32x128xf32>
    %4 = arith.index_cast %arg0 : i32 to index
    %5 = memref.load %arg5[%4] : memref<2xf32, #tpu.memory_space<smem>>
    %cst = arith.constant 1.000000e+00 : f32
    %6 = arith.addf %cst, %5 : f32
    %c0_2 = arith.constant 0 : index
    %c0_3 = arith.constant 0 : index
    %c0_4 = arith.constant 0 : index
    %7 = vector.load %arg8[%c0_2, %c0_3, %c0_4] : memref<1x8x256xf32, #tpu.memory_space<vmem>>, vector<1x8x256xf32>
    %8 = vector.shape_cast %7 : vector<1x8x256xf32> to vector<8x256xf32>
    %9 = vector.extract_strided_slice %8 {offsets = [0, 0], sizes = [1, 256], strides = [1, 1]} : vector<8x256xf32> to vector<1x256xf32>
    %10 = vector.extract_strided_slice %8 {offsets = [1, 0], sizes = [1, 256], strides = [1, 1]} : vector<8x256xf32> to vector<1x256xf32>
    %11 = vector.extract_strided_slice %8 {offsets = [2, 0], sizes = [1, 128], strides = [1, 1]} : vector<8x256xf32> to vector<1x128xf32>
    %12 = vector.extract_strided_slice %8 {offsets = [3, 0], sizes = [1, 128], strides = [1, 1]} : vector<8x256xf32> to vector<1x128xf32>
    %c0_5 = arith.constant 0 : index
    %c0_6 = arith.constant 0 : index
    %13 = vector.load %arg2[%c0_5, %c0_6] : memref<32x32xbf16, #tpu.memory_space<vmem>>, vector<32x32xbf16>
    %14 = arith.truncf %3 : vector<32x128xf32> to vector<32x128xbf16>
    %cst_7 = arith.constant dense<0.000000e+00> : vector<32x128xf32>
    %15 = tpu.matmul %13, %14, %cst_7 {dimension_numbers = #tpu.dot_dimension_numbers<[1], [0], [0], [1], [0, 0, 1, 1], [], []>} : vector<32x32xbf16>, vector<32x128xbf16>, vector<32x128xf32> -> vector<32x128xf32>
    %16 = vector.broadcast %6 : f32 to vector<32x128xf32>
    %17 = arith.mulf %16, %3 : vector<32x128xf32>
    %18 = arith.addf %17, %15 : vector<32x128xf32>
    %19 = arith.truncf %18 : vector<32x128xf32> to vector<32x128xbf16>
    %c0_8 = arith.constant 0 : index
    %c0_9 = arith.constant 0 : index
    %c0_10 = arith.constant 0 : index
    %20 = vector.load %arg6[%c0_8, %c0_9, %c0_10] : memref<1x128x256xbf16, #tpu.memory_space<vmem>>, vector<1x128x256xbf16>
    %21 = vector.shape_cast %20 : vector<1x128x256xbf16> to vector<128x256xbf16>
    %cst_11 = arith.constant dense<0.000000e+00> : vector<32x256xf32>
    %22 = tpu.matmul %19, %21, %cst_11 {dimension_numbers = #tpu.dot_dimension_numbers<[1], [0], [0], [1], [0, 0, 1, 1], [], []>} : vector<32x128xbf16>, vector<128x256xbf16>, vector<32x256xf32> -> vector<32x256xf32>
    %23 = vector.extract_strided_slice %22 {offsets = [0, 0], sizes = [1, 256], strides = [1, 1]} : vector<32x256xf32> to vector<1x256xf32>
    %24 = vector.broadcast %23 : vector<1x256xf32> to vector<32x256xf32>
    %25 = arith.subf %22, %24 : vector<32x256xf32>
    %cst_12 = arith.constant dense<0.000000e+00> : vector<256xf32>
    %26 = vector.multi_reduction <add>, %25, %cst_12 [0] : vector<32x256xf32> to vector<256xf32>
    %27 = vector.shape_cast %26 : vector<256xf32> to vector<1x256xf32>
    %28 = arith.mulf %25, %25 : vector<32x256xf32>
    %cst_13 = arith.constant dense<0.000000e+00> : vector<256xf32>
    %29 = vector.multi_reduction <add>, %28, %cst_13 [0] : vector<32x256xf32> to vector<256xf32>
    %30 = vector.shape_cast %29 : vector<256xf32> to vector<1x256xf32>
    %cst_14 = arith.constant 3.125000e-02 : f32
    %31 = vector.broadcast %cst_14 : f32 to vector<1x256xf32>
    %32 = arith.mulf %27, %31 : vector<1x256xf32>
    %cst_15 = arith.constant 3.125000e-02 : f32
    %33 = vector.broadcast %cst_15 : f32 to vector<1x256xf32>
    %34 = arith.mulf %30, %33 : vector<1x256xf32>
    %35 = arith.mulf %32, %32 : vector<1x256xf32>
    %36 = arith.subf %34, %35 : vector<1x256xf32>
    %cst_16 = arith.constant 0.000000e+00 : f32
    %37 = vector.broadcast %cst_16 : f32 to vector<1x256xf32>
    %38 = arith.maximumf %36, %37 : vector<1x256xf32>
    %39 = arith.addf %23, %32 : vector<1x256xf32>
    %cst_17 = arith.constant 9.99999974E-6 : f32
    %40 = vector.broadcast %cst_17 : f32 to vector<1x256xf32>
    %41 = arith.addf %38, %40 : vector<1x256xf32>
    %42 = math.rsqrt %41 : vector<1x256xf32>
    %43 = arith.mulf %9, %42 : vector<1x256xf32>
    %44 = arith.mulf %39, %43 : vector<1x256xf32>
    %45 = arith.subf %10, %44 : vector<1x256xf32>
    %46 = vector.broadcast %43 : vector<1x256xf32> to vector<32x256xf32>
    %47 = arith.mulf %22, %46 : vector<32x256xf32>
    %48 = vector.broadcast %45 : vector<1x256xf32> to vector<32x256xf32>
    %49 = arith.addf %47, %48 : vector<32x256xf32>
    %cst_18 = arith.constant 0.000000e+00 : f32
    %50 = vector.broadcast %cst_18 : f32 to vector<32x256xf32>
    %51 = arith.maximumf %49, %50 : vector<32x256xf32>
    %52 = arith.truncf %51 : vector<32x256xf32> to vector<32x256xbf16>
    %c0_19 = arith.constant 0 : index
    %c0_20 = arith.constant 0 : index
    %c0_21 = arith.constant 0 : index
    %53 = vector.load %arg7[%c0_19, %c0_20, %c0_21] : memref<1x256x128xbf16, #tpu.memory_space<vmem>>, vector<1x256x128xbf16>
    %54 = vector.shape_cast %53 : vector<1x256x128xbf16> to vector<256x128xbf16>
    %cst_22 = arith.constant dense<0.000000e+00> : vector<32x128xf32>
    %55 = tpu.matmul %52, %54, %cst_22 {dimension_numbers = #tpu.dot_dimension_numbers<[1], [0], [0], [1], [0, 0, 1, 1], [], []>} : vector<32x256xbf16>, vector<256x128xbf16>, vector<32x128xf32> -> vector<32x128xf32>
    %56 = vector.extract_strided_slice %55 {offsets = [0, 0], sizes = [1, 128], strides = [1, 1]} : vector<32x128xf32> to vector<1x128xf32>
    %57 = vector.broadcast %56 : vector<1x128xf32> to vector<32x128xf32>
    %58 = arith.subf %55, %57 : vector<32x128xf32>
    %cst_23 = arith.constant dense<0.000000e+00> : vector<128xf32>
    %59 = vector.multi_reduction <add>, %58, %cst_23 [0] : vector<32x128xf32> to vector<128xf32>
    %60 = vector.shape_cast %59 : vector<128xf32> to vector<1x128xf32>
    %61 = arith.mulf %58, %58 : vector<32x128xf32>
    %cst_24 = arith.constant dense<0.000000e+00> : vector<128xf32>
    %62 = vector.multi_reduction <add>, %61, %cst_24 [0] : vector<32x128xf32> to vector<128xf32>
    %63 = vector.shape_cast %62 : vector<128xf32> to vector<1x128xf32>
    %cst_25 = arith.constant 3.125000e-02 : f32
    %64 = vector.broadcast %cst_25 : f32 to vector<1x128xf32>
    %65 = arith.mulf %60, %64 : vector<1x128xf32>
    %cst_26 = arith.constant 3.125000e-02 : f32
    %66 = vector.broadcast %cst_26 : f32 to vector<1x128xf32>
    %67 = arith.mulf %63, %66 : vector<1x128xf32>
    %68 = arith.mulf %65, %65 : vector<1x128xf32>
    %69 = arith.subf %67, %68 : vector<1x128xf32>
    %cst_27 = arith.constant 0.000000e+00 : f32
    %70 = vector.broadcast %cst_27 : f32 to vector<1x128xf32>
    %71 = arith.maximumf %69, %70 : vector<1x128xf32>
    %72 = arith.addf %56, %65 : vector<1x128xf32>
    %cst_28 = arith.constant 9.99999974E-6 : f32
    %73 = vector.broadcast %cst_28 : f32 to vector<1x128xf32>
    %74 = arith.addf %71, %73 : vector<1x128xf32>
    %75 = math.rsqrt %74 : vector<1x128xf32>
    %76 = arith.mulf %11, %75 : vector<1x128xf32>
    %77 = arith.mulf %72, %76 : vector<1x128xf32>
    %78 = arith.subf %12, %77 : vector<1x128xf32>
    %79 = vector.broadcast %76 : vector<1x128xf32> to vector<32x128xf32>
    %80 = arith.mulf %55, %79 : vector<32x128xf32>
    %81 = vector.broadcast %78 : vector<1x128xf32> to vector<32x128xf32>
    %82 = arith.addf %80, %81 : vector<32x128xf32>
    %cst_29 = arith.constant 0.000000e+00 : f32
    %83 = vector.broadcast %cst_29 : f32 to vector<32x128xf32>
    %84 = arith.maximumf %82, %83 : vector<32x128xf32>
    %85 = arith.addf %84, %3 : vector<32x128xf32>
    %c0_30 = arith.constant 0 : index
    %c0_31 = arith.constant 0 : index
    %86 = vector.load %arg12[%c0_30, %c0_31] : memref<32x128xf32, #tpu.memory_space<vmem>>, vector<32x128xf32>
    tpu.vector_store %arg12[%c0_30, %c0_31], %85 {strides = array<i32>} : memref<32x128xf32, #tpu.memory_space<vmem>>, vector<32x128xf32>,
    %c1_i32 = arith.constant 1 : i32
    %87 = arith.cmpi eq, %arg0, %c1_i32 : i32
    %88 = arith.extui %87 : i1 to i32
    %c0_i32_32 = arith.constant 0 : i32
    %89 = arith.cmpi ne, %88, %c0_i32_32 : i32
    scf.if %89 {
      %c0_33 = arith.constant 0 : index
      %c0_34 = arith.constant 0 : index
      %90 = vector.load %arg12[%c0_33, %c0_34] : memref<32x128xf32, #tpu.memory_space<vmem>>, vector<32x128xf32>
      %91 = arith.truncf %90 : vector<32x128xf32> to vector<32x128xbf16>
      %c0_35 = arith.constant 0 : index
      %c0_36 = arith.constant 0 : index
      %92 = vector.load %arg9[%c0_35, %c0_36] : memref<128x128xbf16, #tpu.memory_space<vmem>>, vector<128x128xbf16>
      %cst_37 = arith.constant dense<0.000000e+00> : vector<32x128xf32>
      %93 = tpu.matmul %91, %92, %cst_37 {dimension_numbers = #tpu.dot_dimension_numbers<[1], [0], [0], [1], [0, 0, 1, 1], [], []>} : vector<32x128xbf16>, vector<128x128xbf16>, vector<32x128xf32> -> vector<32x128xf32>
      %c0_38 = arith.constant 0 : index
      %c0_39 = arith.constant 0 : index
      %94 = vector.load %arg10[%c0_38, %c0_39] : memref<1x128xf32, #tpu.memory_space<vmem>>, vector<1x128xf32>
      %95 = vector.broadcast %94 : vector<1x128xf32> to vector<32x128xf32>
      %96 = arith.addf %93, %95 : vector<32x128xf32>
      %c0_40 = arith.constant 0 : index
      %c0_41 = arith.constant 0 : index
      %97 = vector.load %arg11[%c0_40, %c0_41] : memref<32x128xf32, #tpu.memory_space<vmem>>, vector<32x128xf32>
      tpu.vector_store %arg11[%c0_40, %c0_41], %96 {strides = array<i32>} : memref<32x128xf32, #tpu.memory_space<vmem>>, vector<32x128xf32>,
    } else {
    }
    return
  }
  func.func @transform_0(%arg0: i32) -> (i32, i32) {
    %c0_i32 = arith.constant 0 : i32
    %c0_i32_0 = arith.constant 0 : i32
    %c0_i32_1 = arith.constant 0 : i32
    return %c0_i32, %c0_i32_0 : i32, i32
  }
  func.func @transform_1(%arg0: i32) -> (i32, i32) {
    %c0_i32 = arith.constant 0 : i32
    %c0_i32_0 = arith.constant 0 : i32
    %c0_i32_1 = arith.constant 0 : i32
    return %c0_i32, %c0_i32_0 : i32, i32
  }
  func.func @transform_2(%arg0: i32) -> (i32, i32) {
    %c0_i32 = arith.constant 0 : i32
    %c0_i32_0 = arith.constant 0 : i32
    %c0_i32_1 = arith.constant 0 : i32
    return %c0_i32, %c0_i32_0 : i32, i32
  }
  func.func @transform_3(%arg0: i32) -> (i32, i32) {
    %c0_i32 = arith.constant 0 : i32
    %c0_i32_0 = arith.constant 0 : i32
    %c0_i32_1 = arith.constant 0 : i32
    return %c0_i32, %c0_i32_0 : i32, i32
  }
  func.func @transform_4(%arg0: i32) -> i32 {
    %c0_i32 = arith.constant 0 : i32
    %c0_i32_0 = arith.constant 0 : i32
    return %c0_i32 : i32
  }
  func.func @transform_5(%arg0: i32) -> (i32, i32, i32) {
    %c0_i32 = arith.constant 0 : i32
    %c0_i32_0 = arith.constant 0 : i32
    %c0_i32_1 = arith.constant 0 : i32
    return %arg0, %c0_i32, %c0_i32_0 : i32, i32, i32
  }
  func.func @transform_6(%arg0: i32) -> (i32, i32, i32) {
    %c0_i32 = arith.constant 0 : i32
    %c0_i32_0 = arith.constant 0 : i32
    %c0_i32_1 = arith.constant 0 : i32
    return %arg0, %c0_i32, %c0_i32_0 : i32, i32, i32
  }
  func.func @transform_7(%arg0: i32) -> (i32, i32, i32) {
    %c0_i32 = arith.constant 0 : i32
    %c0_i32_0 = arith.constant 0 : i32
    %c0_i32_1 = arith.constant 0 : i32
    return %arg0, %c0_i32, %c0_i32_0 : i32, i32, i32
  }
  func.func @transform_8(%arg0: i32) -> (i32, i32) {
    %c0_i32 = arith.constant 0 : i32
    %c0_i32_0 = arith.constant 0 : i32
    %c0_i32_1 = arith.constant 0 : i32
    return %c0_i32, %c0_i32_0 : i32, i32
  }
  func.func @transform_9(%arg0: i32) -> (i32, i32) {
    %c0_i32 = arith.constant 0 : i32
    %c0_i32_0 = arith.constant 0 : i32
    %c0_i32_1 = arith.constant 0 : i32
    return %c0_i32, %c0_i32_0 : i32, i32
  }
  func.func @transform_10(%arg0: i32) -> (i32, i32) {
    %c0_i32 = arith.constant 0 : i32
    %c0_i32_0 = arith.constant 0 : i32
    %c0_i32_1 = arith.constant 0 : i32
    return %c0_i32, %c0_i32_0 : i32, i32
  }
}

module attributes {stable_mosaic.version = 11 : i64} {
  func.func @gnn_kernel(%arg0: i32, %arg1: memref<32x8xbf16, #tpu.memory_space<vmem>>, %arg2: memref<32x32xbf16, #tpu.memory_space<vmem>>, %arg3: memref<8x128xbf16, #tpu.memory_space<vmem>>, %arg4: memref<1x128xf32, #tpu.memory_space<vmem>>, %arg5: memref<2xf32, #tpu.memory_space<smem>>, %arg6: memref<1x128x256xbf16, #tpu.memory_space<vmem>>, %arg7: memref<1x256x128xbf16, #tpu.memory_space<vmem>>, %arg8: memref<1x8x256xf32, #tpu.memory_space<vmem>>, %arg9: memref<128x128xbf16, #tpu.memory_space<vmem>>, %arg10: memref<1x128xf32, #tpu.memory_space<vmem>>, %arg11: memref<32x128xf32, #tpu.memory_space<vmem>>, %arg12: memref<32x128xf32, #tpu.memory_space<vmem>>) attributes {dimension_semantics = [#tpu.dimension_semantics<arbitrary>], iteration_bounds = array<i64: 2>, scalar_prefetch = 0 : i64, scratch_operands = 1 : i64, tpu.core_type = #tpu.core_type<tc>, window_params = [{pipeline_mode = #tpu.pipeline_mode<synchronous>, transform_indices = @transform_0, window_bounds = array<i64: 32, 8>}, {pipeline_mode = #tpu.pipeline_mode<synchronous>, transform_indices = @transform_1, window_bounds = array<i64: 32, 32>}, {pipeline_mode = #tpu.pipeline_mode<synchronous>, transform_indices = @transform_2, window_bounds = array<i64: 8, 128>}, {pipeline_mode = #tpu.pipeline_mode<synchronous>, transform_indices = @transform_3, window_bounds = array<i64: 1, 128>}, {transform_indices = @transform_4, window_bounds = array<i64: 2>}, {transform_indices = @transform_5, window_bounds = array<i64: 1, 128, 256>}, {transform_indices = @transform_6, window_bounds = array<i64: 1, 256, 128>}, {transform_indices = @transform_7, window_bounds = array<i64: 1, 8, 256>}, {pipeline_mode = #tpu.pipeline_mode<synchronous>, transform_indices = @transform_8, window_bounds = array<i64: 128, 128>}, {pipeline_mode = #tpu.pipeline_mode<synchronous>, transform_indices = @transform_9, window_bounds = array<i64: 1, 128>}, {pipeline_mode = #tpu.pipeline_mode<synchronous>, transform_indices = @transform_10, window_bounds = array<i64: 32, 128>}]} {
    %c0_i32 = arith.constant 0 : i32
    %0 = arith.cmpi eq, %arg0, %c0_i32 : i32
    %1 = arith.extui %0 : i1 to i32
    %c0_i32_0 = arith.constant 0 : i32
    %2 = arith.cmpi ne, %1, %c0_i32_0 : i32
    scf.if %2 {
      %c0_33 = arith.constant 0 : index
      %c0_34 = arith.constant 0 : index
      %90 = vector.load %arg1[%c0_33, %c0_34] : memref<32x8xbf16, #tpu.memory_space<vmem>>, vector<32x8xbf16>
      %c0_35 = arith.constant 0 : index
      %c0_36 = arith.constant 0 : index
      %91 = vector.load %arg3[%c0_35, %c0_36] : memref<8x128xbf16, #tpu.memory_space<vmem>>, vector<8x128xbf16>
      %cst_37 = arith.constant dense<0.000000e+00> : vector<32x128xf32>
      %92 = tpu.matmul %90, %91, %cst_37 {dimension_numbers = #tpu.dot_dimension_numbers<[1], [0], [0], [1], [0, 0, 1, 1], [], []>} : vector<32x8xbf16>, vector<8x128xbf16>, vector<32x128xf32> -> vector<32x128xf32>
      %c0_38 = arith.constant 0 : index
      %c0_39 = arith.constant 0 : index
      %93 = vector.load %arg4[%c0_38, %c0_39] : memref<1x128xf32, #tpu.memory_space<vmem>>, vector<1x128xf32>
      %94 = vector.broadcast %93 : vector<1x128xf32> to vector<32x128xf32>
      %95 = arith.addf %92, %94 : vector<32x128xf32>
      %c0_40 = arith.constant 0 : index
      %c0_41 = arith.constant 0 : index
      %96 = vector.load %arg12[%c0_40, %c0_41] : memref<32x128xf32, #tpu.memory_space<vmem>>, vector<32x128xf32>
      tpu.vector_store %arg12[%c0_40, %c0_41], %95 {strides = array<i32>} : memref<32x128xf32, #tpu.memory_space<vmem>>, vector<32x128xf32>,
    } else {
    }
    %c0 = arith.constant 0 : index
    %c0_1 = arith.constant 0 : index
    %3 = vector.load %arg12[%c0, %c0_1] : memref<32x128xf32, #tpu.memory_space<vmem>>, vector<32x128xf32>
    %4 = arith.index_cast %arg0 : i32 to index
    %5 = memref.load %arg5[%4] : memref<2xf32, #tpu.memory_space<smem>>
    %cst = arith.constant 1.000000e+00 : f32
    %6 = arith.addf %cst, %5 : f32
    %c0_2 = arith.constant 0 : index
    %c0_3 = arith.constant 0 : index
    %c0_4 = arith.constant 0 : index
    %7 = vector.load %arg8[%c0_2, %c0_3, %c0_4] : memref<1x8x256xf32, #tpu.memory_space<vmem>>, vector<1x8x256xf32>
    %8 = vector.shape_cast %7 : vector<1x8x256xf32> to vector<8x256xf32>
    %9 = vector.extract_strided_slice %8 {offsets = [0, 0], sizes = [1, 256], strides = [1, 1]} : vector<8x256xf32> to vector<1x256xf32>
    %10 = vector.extract_strided_slice %8 {offsets = [1, 0], sizes = [1, 256], strides = [1, 1]} : vector<8x256xf32> to vector<1x256xf32>
    %11 = vector.extract_strided_slice %8 {offsets = [2, 0], sizes = [1, 128], strides = [1, 1]} : vector<8x256xf32> to vector<1x128xf32>
    %12 = vector.extract_strided_slice %8 {offsets = [3, 0], sizes = [1, 128], strides = [1, 1]} : vector<8x256xf32> to vector<1x128xf32>
    %c0_5 = arith.constant 0 : index
    %c0_6 = arith.constant 0 : index
    %13 = vector.load %arg2[%c0_5, %c0_6] : memref<32x32xbf16, #tpu.memory_space<vmem>>, vector<32x32xbf16>
    %14 = arith.truncf %3 : vector<32x128xf32> to vector<32x128xbf16>
    %cst_7 = arith.constant dense<0.000000e+00> : vector<32x128xf32>
    %15 = tpu.matmul %13, %14, %cst_7 {dimension_numbers = #tpu.dot_dimension_numbers<[1], [0], [0], [1], [0, 0, 1, 1], [], []>} : vector<32x32xbf16>, vector<32x128xbf16>, vector<32x128xf32> -> vector<32x128xf32>
    %16 = vector.broadcast %6 : f32 to vector<32x128xf32>
    %17 = arith.mulf %16, %3 : vector<32x128xf32>
    %18 = arith.addf %17, %15 : vector<32x128xf32>
    %19 = arith.truncf %18 : vector<32x128xf32> to vector<32x128xbf16>
    %c0_8 = arith.constant 0 : index
    %c0_9 = arith.constant 0 : index
    %c0_10 = arith.constant 0 : index
    %20 = vector.load %arg6[%c0_8, %c0_9, %c0_10] : memref<1x128x256xbf16, #tpu.memory_space<vmem>>, vector<1x128x256xbf16>
    %21 = vector.shape_cast %20 : vector<1x128x256xbf16> to vector<128x256xbf16>
    %cst_11 = arith.constant dense<0.000000e+00> : vector<32x256xf32>
    %22 = tpu.matmul %19, %21, %cst_11 {dimension_numbers = #tpu.dot_dimension_numbers<[1], [0], [0], [1], [0, 0, 1, 1], [], []>} : vector<32x128xbf16>, vector<128x256xbf16>, vector<32x256xf32> -> vector<32x256xf32>
    %23 = vector.extract_strided_slice %22 {offsets = [0, 0], sizes = [1, 256], strides = [1, 1]} : vector<32x256xf32> to vector<1x256xf32>
    %24 = vector.broadcast %23 : vector<1x256xf32> to vector<32x256xf32>
    %25 = arith.subf %22, %24 : vector<32x256xf32>
    %cst_12 = arith.constant dense<0.000000e+00> : vector<256xf32>
    %26 = vector.multi_reduction <add>, %25, %cst_12 [0] : vector<32x256xf32> to vector<256xf32>
    %27 = vector.shape_cast %26 : vector<256xf32> to vector<1x256xf32>
    %28 = arith.mulf %25, %25 : vector<32x256xf32>
    %cst_13 = arith.constant dense<0.000000e+00> : vector<256xf32>
    %29 = vector.multi_reduction <add>, %28, %cst_13 [0] : vector<32x256xf32> to vector<256xf32>
    %30 = vector.shape_cast %29 : vector<256xf32> to vector<1x256xf32>
    %cst_14 = arith.constant 3.125000e-02 : f32
    %31 = vector.broadcast %cst_14 : f32 to vector<1x256xf32>
    %32 = arith.mulf %27, %31 : vector<1x256xf32>
    %cst_15 = arith.constant 3.125000e-02 : f32
    %33 = vector.broadcast %cst_15 : f32 to vector<1x256xf32>
    %34 = arith.mulf %30, %33 : vector<1x256xf32>
    %35 = arith.mulf %32, %32 : vector<1x256xf32>
    %36 = arith.subf %34, %35 : vector<1x256xf32>
    %cst_16 = arith.constant 0.000000e+00 : f32
    %37 = vector.broadcast %cst_16 : f32 to vector<1x256xf32>
    %38 = arith.maximumf %36, %37 : vector<1x256xf32>
    %39 = arith.addf %23, %32 : vector<1x256xf32>
    %cst_17 = arith.constant 9.99999974E-6 : f32
    %40 = vector.broadcast %cst_17 : f32 to vector<1x256xf32>
    %41 = arith.addf %38, %40 : vector<1x256xf32>
    %42 = math.rsqrt %41 : vector<1x256xf32>
    %43 = arith.mulf %9, %42 : vector<1x256xf32>
    %44 = arith.mulf %39, %43 : vector<1x256xf32>
    %45 = arith.subf %10, %44 : vector<1x256xf32>
    %46 = vector.broadcast %43 : vector<1x256xf32> to vector<32x256xf32>
    %47 = arith.mulf %22, %46 : vector<32x256xf32>
    %48 = vector.broadcast %45 : vector<1x256xf32> to vector<32x256xf32>
    %49 = arith.addf %47, %48 : vector<32x256xf32>
    %cst_18 = arith.constant 0.000000e+00 : f32
    %50 = vector.broadcast %cst_18 : f32 to vector<32x256xf32>
    %51 = arith.maximumf %49, %50 : vector<32x256xf32>
    %52 = arith.truncf %51 : vector<32x256xf32> to vector<32x256xbf16>
    %c0_19 = arith.constant 0 : index
    %c0_20 = arith.constant 0 : index
    %c0_21 = arith.constant 0 : index
    %53 = vector.load %arg7[%c0_19, %c0_20, %c0_21] : memref<1x256x128xbf16, #tpu.memory_space<vmem>>, vector<1x256x128xbf16>
    %54 = vector.shape_cast %53 : vector<1x256x128xbf16> to vector<256x128xbf16>
    %cst_22 = arith.constant dense<0.000000e+00> : vector<32x128xf32>
    %55 = tpu.matmul %52, %54, %cst_22 {dimension_numbers = #tpu.dot_dimension_numbers<[1], [0], [0], [1], [0, 0, 1, 1], [], []>} : vector<32x256xbf16>, vector<256x128xbf16>, vector<32x128xf32> -> vector<32x128xf32>
    %56 = vector.extract_strided_slice %55 {offsets = [0, 0], sizes = [1, 128], strides = [1, 1]} : vector<32x128xf32> to vector<1x128xf32>
    %57 = vector.broadcast %56 : vector<1x128xf32> to vector<32x128xf32>
    %58 = arith.subf %55, %57 : vector<32x128xf32>
    %cst_23 = arith.constant dense<0.000000e+00> : vector<128xf32>
    %59 = vector.multi_reduction <add>, %58, %cst_23 [0] : vector<32x128xf32> to vector<128xf32>
    %60 = vector.shape_cast %59 : vector<128xf32> to vector<1x128xf32>
    %61 = arith.mulf %58, %58 : vector<32x128xf32>
    %cst_24 = arith.constant dense<0.000000e+00> : vector<128xf32>
    %62 = vector.multi_reduction <add>, %61, %cst_24 [0] : vector<32x128xf32> to vector<128xf32>
    %63 = vector.shape_cast %62 : vector<128xf32> to vector<1x128xf32>
    %cst_25 = arith.constant 3.125000e-02 : f32
    %64 = vector.broadcast %cst_25 : f32 to vector<1x128xf32>
    %65 = arith.mulf %60, %64 : vector<1x128xf32>
    %cst_26 = arith.constant 3.125000e-02 : f32
    %66 = vector.broadcast %cst_26 : f32 to vector<1x128xf32>
    %67 = arith.mulf %63, %66 : vector<1x128xf32>
    %68 = arith.mulf %65, %65 : vector<1x128xf32>
    %69 = arith.subf %67, %68 : vector<1x128xf32>
    %cst_27 = arith.constant 0.000000e+00 : f32
    %70 = vector.broadcast %cst_27 : f32 to vector<1x128xf32>
    %71 = arith.maximumf %69, %70 : vector<1x128xf32>
    %72 = arith.addf %56, %65 : vector<1x128xf32>
    %cst_28 = arith.constant 9.99999974E-6 : f32
    %73 = vector.broadcast %cst_28 : f32 to vector<1x128xf32>
    %74 = arith.addf %71, %73 : vector<1x128xf32>
    %75 = math.rsqrt %74 : vector<1x128xf32>
    %76 = arith.mulf %11, %75 : vector<1x128xf32>
    %77 = arith.mulf %72, %76 : vector<1x128xf32>
    %78 = arith.subf %12, %77 : vector<1x128xf32>
    %79 = vector.broadcast %76 : vector<1x128xf32> to vector<32x128xf32>
    %80 = arith.mulf %55, %79 : vector<32x128xf32>
    %81 = vector.broadcast %78 : vector<1x128xf32> to vector<32x128xf32>
    %82 = arith.addf %80, %81 : vector<32x128xf32>
    %cst_29 = arith.constant 0.000000e+00 : f32
    %83 = vector.broadcast %cst_29 : f32 to vector<32x128xf32>
    %84 = arith.maximumf %82, %83 : vector<32x128xf32>
    %85 = arith.addf %84, %3 : vector<32x128xf32>
    %c0_30 = arith.constant 0 : index
    %c0_31 = arith.constant 0 : index
    %86 = vector.load %arg12[%c0_30, %c0_31] : memref<32x128xf32, #tpu.memory_space<vmem>>, vector<32x128xf32>
    tpu.vector_store %arg12[%c0_30, %c0_31], %85 {strides = array<i32>} : memref<32x128xf32, #tpu.memory_space<vmem>>, vector<32x128xf32>,
    %c1_i32 = arith.constant 1 : i32
    %87 = arith.cmpi eq, %arg0, %c1_i32 : i32
    %88 = arith.extui %87 : i1 to i32
    %c0_i32_32 = arith.constant 0 : i32
    %89 = arith.cmpi ne, %88, %c0_i32_32 : i32
    scf.if %89 {
      %c0_33 = arith.constant 0 : index
      %c0_34 = arith.constant 0 : index
      %90 = vector.load %arg12[%c0_33, %c0_34] : memref<32x128xf32, #tpu.memory_space<vmem>>, vector<32x128xf32>
      %91 = arith.truncf %90 : vector<32x128xf32> to vector<32x128xbf16>
      %c0_35 = arith.constant 0 : index
      %c0_36 = arith.constant 0 : index
      %92 = vector.load %arg9[%c0_35, %c0_36] : memref<128x128xbf16, #tpu.memory_space<vmem>>, vector<128x128xbf16>
      %cst_37 = arith.constant dense<0.000000e+00> : vector<32x128xf32>
      %93 = tpu.matmul %91, %92, %cst_37 {dimension_numbers = #tpu.dot_dimension_numbers<[1], [0], [0], [1], [0, 0, 1, 1], [], []>} : vector<32x128xbf16>, vector<128x128xbf16>, vector<32x128xf32> -> vector<32x128xf32>
      %c0_38 = arith.constant 0 : index
      %c0_39 = arith.constant 0 : index
      %94 = vector.load %arg10[%c0_38, %c0_39] : memref<1x128xf32, #tpu.memory_space<vmem>>, vector<1x128xf32>
      %95 = vector.broadcast %94 : vector<1x128xf32> to vector<32x128xf32>
      %96 = arith.addf %93, %95 : vector<32x128xf32>
      %c0_40 = arith.constant 0 : index
      %c0_41 = arith.constant 0 : index
      %97 = vector.load %arg11[%c0_40, %c0_41] : memref<32x128xf32, #tpu.memory_space<vmem>>, vector<32x128xf32>
      tpu.vector_store %arg11[%c0_40, %c0_41], %96 {strides = array<i32>} : memref<32x128xf32, #tpu.memory_space<vmem>>, vector<32x128xf32>,
    } else {
    }
    return
  }
  func.func @transform_0(%arg0: i32) -> (i32, i32) {
    %c0_i32 = arith.constant 0 : i32
    %c0_i32_0 = arith.constant 0 : i32
    %c0_i32_1 = arith.constant 0 : i32
    return %c0_i32, %c0_i32_0 : i32, i32
  }
  func.func @transform_1(%arg0: i32) -> (i32, i32) {
    %c0_i32 = arith.constant 0 : i32
    %c0_i32_0 = arith.constant 0 : i32
    %c0_i32_1 = arith.constant 0 : i32
    return %c0_i32, %c0_i32_0 : i32, i32
  }
  func.func @transform_2(%arg0: i32) -> (i32, i32) {
    %c0_i32 = arith.constant 0 : i32
    %c0_i32_0 = arith.constant 0 : i32
    %c0_i32_1 = arith.constant 0 : i32
    return %c0_i32, %c0_i32_0 : i32, i32
  }
  func.func @transform_3(%arg0: i32) -> (i32, i32) {
    %c0_i32 = arith.constant 0 : i32
    %c0_i32_0 = arith.constant 0 : i32
    %c0_i32_1 = arith.constant 0 : i32
    return %c0_i32, %c0_i32_0 : i32, i32
  }
  func.func @transform_4(%arg0: i32) -> i32 {
    %c0_i32 = arith.constant 0 : i32
    %c0_i32_0 = arith.constant 0 : i32
    return %c0_i32 : i32
  }
  func.func @transform_5(%arg0: i32) -> (i32, i32, i32) {
    %c0_i32 = arith.constant 0 : i32
    %c0_i32_0 = arith.constant 0 : i32
    %c0_i32_1 = arith.constant 0 : i32
    return %arg0, %c0_i32, %c0_i32_0 : i32, i32, i32
  }
  func.func @transform_6(%arg0: i32) -> (i32, i32, i32) {
    %c0_i32 = arith.constant 0 : i32
    %c0_i32_0 = arith.constant 0 : i32
    %c0_i32_1 = arith.constant 0 : i32
    return %arg0, %c0_i32, %c0_i32_0 : i32, i32, i32
  }
  func.func @transform_7(%arg0: i32) -> (i32, i32, i32) {
    %c0_i32 = arith.constant 0 : i32
    %c0_i32_0 = arith.constant 0 : i32
    %c0_i32_1 = arith.constant 0 : i32
    return %arg0, %c0_i32, %c0_i32_0 : i32, i32, i32
  }
  func.func @transform_8(%arg0: i32) -> (i32, i32) {
    %c0_i32 = arith.constant 0 : i32
    %c0_i32_0 = arith.constant 0 : i32
    %c0_i32_1 = arith.constant 0 : i32
    return %c0_i32, %c0_i32_0 : i32, i32
  }
  func.func @transform_9(%arg0: i32) -> (i32, i32) {
    %c0_i32 = arith.constant 0 : i32
    %c0_i32_0 = arith.constant 0 : i32
    %c0_i32_1 = arith.constant 0 : i32
    return %c0_i32, %c0_i32_0 : i32, i32
  }
  func.func @transform_10(%arg0: i32) -> (i32, i32) {
    %c0_i32 = arith.constant 0 : i32
    %c0_i32_0 = arith.constant 0 : i32
    %c0_i32_1 = arith.constant 0 : i32
    return %c0_i32, %c0_i32_0 : i32, i32
  }
}

</mosaic_0001>

<bundles_post_ra>
// kernel: tpu_custom_call.1
= control target key start
LH: loop header
LB: loop body
LE: loop exit
PB: predicated region body
PF: predicated region fallthrough
CT: control target
= control target key end

     0   :  { %s2508_s0 = inlined_call_operand.vmem [shape: bf16[32,8], index: 0, kind: input, shape index: {}]   ;;  %s2509_s1 = inlined_call_operand.hbm [shape: bf16[32,32], index: 1, kind: input, shape index: {}]   ;;  %s2510_s2 = inlined_call_operand.hbm [shape: bf16[8,128], index: 2, kind: input, shape index: {}]   ;;  %s2511_s3 = inlined_call_operand.hbm [shape: f32[1,128], index: 3, kind: input, shape index: {}]   ;;  %s2512_s4 = inlined_call_operand.hbm [shape: f32[2], index: 4, kind: input, shape index: {}]   ;;  %s2513_s5 = inlined_call_operand.hbm [shape: bf16[2,128,256], index: 5, kind: input, shape index: {}]   ;;  %s2514_s6 = inlined_call_operand.hbm [shape: bf16[2,256,128], index: 6, kind: input, shape index: {}]   ;;  %s2515_s7 = inlined_call_operand.vmem [shape: f32[2,8,256], index: 7, kind: input, shape index: {}]   ;;  %s2516_s8 = inlined_call_operand.hbm [shape: bf16[128,128], index: 8, kind: input, shape index: {}]   ;;  %s2517_s9 = inlined_call_operand.vmem [shape: f32[1,128], index: 9, kind: input, shape index: {}]   ;;  %s2518_s10 = inlined_call_operand.hbm [shape: f32[32,128], index: 10, kind: output, shape index: {}]  }
   0x1   :  { %2527 = sst [smem:[#allocation26_spill]] %s2510_s2 }
   0x2   :  { %2528 = sst [smem:[#allocation27_spill]] %s2513_s5 }
   0x3   :  { %15 = vsyncpa [#allocation4], 0 }
   0x4   :  { %16 = vsyncpa [#allocation8], 0 }
   0x5   :  { %17 = vsyncpa [#allocation6], 0 }
   0x6   :  { %18 = vsyncpa [#allocation12], 0 }
   0x7   :  { %20 = vsyncpa [#allocation12 + $0x1], 0 }
   0x8   :  { %21 = vsyncpa [#allocation15], 0 }
   0x9   :  { %22 = vsyncpa [#allocation5], 0  ;;  %s2134_s13 = smov 0   ;;  %s2136_s14 = smov 0  }
   0xa   :  { %s2138_s15 = smov 0   ;;  %s2140_s16 = smov 0  }
   0xb LB: > { %2529 = sst [smem:[#allocation23_spill]] %s2058_s15  ;;  %s2064_s17 = smov [#allocation7]   ;;  %s2062_s16 = sphi %s2140_s16, %s2553_s16   ;;  %s2058_s15 = sphi %s2138_s15, %s2555_s15   ;;  %s2054_s14 = sphi %s2136_s14, %s2557_s14   ;;  %s2050_s13 = sphi %s2134_s13, %s2556_s13  }
   0xc   : > { %s308_s18 = sshll.u32 %s2064_s17, 4  ;;  %s2155_s19 = sadd.s32 4294967295, %s2062_s16   ;;  %s309_s18 = int_to_ptr.vmem [resolvable:$true] %s308_s18 }
   0xd   : > { %p1484_p0 = scmp.ge.s32.totalorder %s2062_s16, 1  ;;  %p2520_p1 = scmp.eq.s32.totalorder %s2155_s19, 0 }
   0xe   : > { %p279_p2 = scmp.lt.s32.totalorder %s2062_s16, 3  ;;  %s2174_s22 = sadd.s32 1, %s2062_s16  }
   0xf   : > { %2532 = sst [smem:[#allocation24_spill]] %s2174_s22  ;;  %s140_s23 = sadd.s32 1, %s2058_s15 }
  0x10   : > { %p2161_p4 = pnand %p1484_p0, %p279_p2  ;;  %s137_s24 = ssub.s32 %s2062_s16, %s2174_s22 }
  0x11   : > { %s1824_s25 = scalar_lea.vmem %s309_s18, 64  ;;  %p1832_p11 = scmp.lt.s32.totalorder %s309_s18, %s309_s18 }
  0x12   : > { %s2530_s20 = scalar_select %p2161_p4, 1, 0 }
  0x13   : > { %p1674_p5 = pneg %p2161_p4  ;;  %p1825_p8 = scmp.ne.s32.totalorder %s309_s18, %s1824_s25 }
  0x14   : > { %p1833_p12 = scmp.lt.s32.totalorder %s1824_s25, %s1824_s25 }
  0x15   : > { %p2169_p6 = pnand %p1674_p5, %p2520_p1 }
  0x16   : > { %p1834_p13 = por %p1833_p12, %p1832_p11 }
  0x17   : > { %p2521_p7 = pneg %p2169_p6 }
  0x19   : > { %p1827_p9 = pnand %p1825_p8, %p2521_p7 }
  0x1b   : > { %p1828_p10 = pneg %p1827_p9 }
  0x1d   : > { %p1835_p0 = pnand %p1834_p13, %p1828_p10 }
  0x1f   : > { %1838 = shalt.err (!%p1835_p0)
}
  0x20   : > { %s2533_s2 = sld [smem:[#allocation26_spill]]  ;;  %p138_p2 = scmp.eq.s32.totalorder %s137_s24, 0 }
  0x21   : > { %p147_p5 = scmp.ne.s32.totalorder %s2058_s15, %s2054_s14  ;;  %p148_p8 = scmp.eq.s32.totalorder %s2062_s16, 0 }
  0x22   : > { %p153_p9 = scmp.ne.s32.totalorder %s2054_s14, %s2050_s13  ;;  %p1702_p12 = scmp.lt.s32.totalorder %s2062_s16, 2 }
  0x23   : > { %s2195_s28 = scalar_select %p138_p2, %s2058_s15, %s140_s23  }
  0x24   : > { %p149_p10 = por %p148_p8, %p147_p5  ;;  %p2199_p11 = por %p2520_p1, %p153_p9 }
  0x25   : > { %2534 = sst [smem:[#allocation25_spill]] %s2195_s28  ;;  %s355_s30 = sand.u32 1, %s2062_s16  }
  0x26   : > { %1680 = dma.hbm_to_vmem [thread:$0]  (!%p2169_p6), %s2533_s2, 64, %s309_s18, [#allocation8]  }
  0x27   : > { %s2535_s29 = scalar_select %p2199_p11, 1, 0 }
  0x28   : > { %s357_s11 = sand.u32 1, %s2058_s15   ;;  %s2519_s17 = sshll.u32 %s2062_s16, 11 }
  0x29   : > { %s2206_s12 = sshll.u32 %s357_s11, 7  ;;  %s2536_s5 = sld [smem:[#allocation27_spill]] }
  0x2a   : > { %s359_s23 = scalar_lea.vmem [#allocation11], %s2206_s12  ;;  %p2217_p13 = pnand %p1702_p12, %p149_p10 }
  0x2b   : > { %s366_s25 = sshll.u32 %s359_s23, 4  ;;  %s2223_s27 = scalar_lea.sflag [#allocation12], %s355_s30  ;;  %s2221_s25 = int_to_ptr.vmem [resolvable:$true] %s366_s25 }
  0x2c   : > { %p1841_p2 = pneg %p2217_p13 }
  0x2f   : > { %s2214_s13 = scalar_lea.hbm %s2536_s5, %s2519_s17  ;;  %s1844_s23 = scalar_lea.hbm %s2536_s5, 4096 }
  0x30   : > { %s1839_s11 = scalar_lea.hbm %s2214_s13, 2048  ;;  %p1845_p9 = scmp.lt.s32.totalorder %s2214_s13, %s2536_s5 }
  0x31   : > { %p1840_p0 = scmp.ne.s32.totalorder %s2214_s13, %s1839_s11  ;;  %p1846_p10 = scmp.lt.s32.totalorder %s1844_s23, %s1839_s11 }
  0x33   : > { %p1842_p5 = pnand %p1841_p2, %p1840_p0  ;;  %p1847_p12 = por %p1846_p10, %p1845_p9 }
  0x35   : > { %p1843_p8 = pneg %p1842_p5 }
  0x37   : > { %p1848_p3 = pnand %p1847_p12, %p1843_p8 }
  0x39   : > { %1851 = shalt.err (!%p1848_p3)
}
  0x3a   : > { %s1852_s30 = scalar_lea.vmem %s2221_s25, 2048  ;;  %s2065_s18 = smov [#allocation11]  }
  0x3b   : > { %p1853_p1 = scmp.ne.s32.totalorder %s2221_s25, %s1852_s30  ;;  %s1857_s24 = sshll.u32 %s2065_s18, 4  ;;  %s1858_s24 = int_to_ptr.vmem [resolvable:$false] %s1857_s24 }
  0x3c   : > { %s1859_s28 = scalar_lea.vmem %s1858_s24, 4096  ;;  %p1860_p7 = scmp.lt.s32.totalorder %s2221_s25, %s1858_s24 }
  0x3d   : > { %p1855_p0 = pnand %p1853_p1, %p1841_p2  ;;  %p1861_p11 = scmp.lt.s32.totalorder %s1859_s28, %s1852_s30 }
  0x3f   : > { %p1856_p5 = pneg %p1855_p0  ;;  %p1862_p4 = por %p1861_p11, %p1860_p7 }
  0x41   : > { %p1863_p9 = pnand %p1862_p4, %p1856_p5 }
  0x43   : > { %1866 = shalt.err (!%p1863_p9)
}
  0x44   : > { %s2066_s2 = smov 128   ;;  %s2067_s17 = smov 8  }
  0x45   : > { %1693 = dma.hbm_to_vmem [thread:$0]  (!%p2217_p13), %s2214_s13, 2048, %s2221_s25, %s2223_s27, %s2066_s2, %s2066_s2, %s2067_s17  }
  0x46   : > { %s2538_s11 = sshll.u32 %s2062_s16, 11  ;;  %s380_s28 = scalar_lea.vmem [#allocation13], %s2206_s12 }
  0x47   : > { %s2255_s24 = scalar_lea.hbm %s2514_s6, %s2538_s11  ;;  %s2258_s30 = sshll.u32 %s380_s28, 4  ;;  %s2285_s30 = int_to_ptr.vmem [resolvable:$true] %s2258_s30 }
  0x48   : > { %s2068_s5 = smov [#allocation3]   ;;  %p2539_p3 = pneg %p2169_p6 }
  0x49   : > { %s294_s15 = sshll.u32 %s2068_s5, 4  ;;  %s295_s15 = int_to_ptr.vmem [resolvable:$true] %s294_s15 }
  0x4a   : > { %s1878_s22 = scalar_lea.vmem %s295_s15, 256  ;;  %p1886_p11 = scmp.lt.s32.totalorder %s295_s15, %s295_s15 }
  0x4b   : > { %p1879_p1 = scmp.ne.s32.totalorder %s295_s15, %s1878_s22  ;;  %p1887_p8 = scmp.lt.s32.totalorder %s1878_s22, %s1878_s22 }
  0x4d   : > { %p1881_p4 = pnand %p1879_p1, %p2539_p3  ;;  %p1888_p10 = por %p1887_p8, %p1886_p11 }
  0x4f   : > { %p1882_p7 = pneg %p1881_p4 }
  0x51   : > { %p1889_p12 = pnand %p1888_p10, %p1882_p7 }
  0x53   : > { %1892 = shalt.err (!%p1889_p12)
}
  0x54   : > { %s2069_s16 = smov 64   ;;  %s2070_s12 = smov 4  }
  0x55   : > { %1677 = dma.hbm_to_vmem [thread:$0]  (!%p2169_p6), %s2509_s1, 256, %s295_s15, [#allocation4], %s2069_s16, %s2069_s16, %s2070_s12  }
  0x56   : > { %s2071_s25 = smov [#allocation9]   ;;  %p2540_p5 = pmov %p2539_p3 }
  0x57   : > { %s319_s2 = sshll.u32 %s2071_s25, 4  ;;  %s320_s2 = int_to_ptr.vmem [resolvable:$true] %s319_s2 }
  0x58   : > { %s1904_s17 = scalar_lea.vmem %s320_s2, 16  ;;  %s1911_s22 = scalar_lea.vmem %s320_s2, 32 }
  0x59   : > { %p1905_p0 = scmp.ne.s32.totalorder %s320_s2, %s1904_s17  ;;  %p1912_p3 = scmp.lt.s32.totalorder %s320_s2, %s320_s2 }
  0x5a   : > { %p1913_p4 = scmp.lt.s32.totalorder %s1911_s22, %s1904_s17 }
  0x5b   : > { %p1907_p9 = pnand %p1905_p0, %p2540_p5 }
  0x5c   : > { %p1914_p7 = por %p1913_p4, %p1912_p3 }
  0x5d   : > { %p1908_p1 = pneg %p1907_p9 }
  0x5f   : > { %p1915_p11 = pnand %p1914_p7, %p1908_p1 }
  0x61   : > { %1918 = shalt.err (!%p1915_p11)
}
  0x62   : > { %1683 = dma.hbm_to_vmem [thread:$0]  (!%p2169_p6), %s2511_s3, 16, %s320_s2, [#allocation8]  }
  0x63   : > { %s2072_s15 = smov [#allocation10]   ;;  %s2073_s5 = smov [#allocation14]  }
  0x64   : > { %1686 = dma.hbm_to_smem (!%p2169_p6), %s2512_s4, 16, %s2072_s15, [#allocation6]  }
  0x65   : > { %s338_s13 = sshll.u32 %s2073_s5, 4  ;;  %p2541_p10 = pmov %p2540_p5  ;;  %s339_s13 = int_to_ptr.vmem [resolvable:$true] %s338_s13 }
  0x66   : > { %s1941_s25 = scalar_lea.vmem %s339_s13, 1024  ;;  %p1949_p5 = scmp.lt.s32.totalorder %s339_s13, %s339_s13 }
  0x67   : > { %p1942_p8 = scmp.ne.s32.totalorder %s339_s13, %s1941_s25  ;;  %p1950_p9 = scmp.lt.s32.totalorder %s1941_s25, %s1941_s25 }
  0x69   : > { %p1944_p12 = pnand %p1942_p8, %p2541_p10  ;;  %p1951_p1 = por %p1950_p9, %p1949_p5 }
  0x6b   : > { %p1945_p0 = pneg %p1944_p12 }
  0x6d   : > { %p1952_p3 = pnand %p1951_p1, %p1945_p0 }
  0x6f   : > { %1955 = shalt.err (!%p1952_p3)
}
  0x70   : > { %1689 = dma.hbm_to_vmem [thread:$0]  (!%p2169_p6), %s2516_s8, 1024, %s339_s13, [#allocation15], %s2069_s16, %s2069_s16, %s2070_s12  }
  0x71   : > { %s1956_s22 = scalar_lea.hbm %s2255_s24, 2048  ;;  %s1961_s21 = scalar_lea.hbm %s2514_s6, 4096 }
  0x72   : > { %p1957_p4 = scmp.ne.s32.totalorder %s2255_s24, %s1956_s22  ;;  %p1962_p8 = scmp.lt.s32.totalorder %s2255_s24, %s2514_s6 }
  0x73   : > { %p1963_p10 = scmp.lt.s32.totalorder %s1961_s21, %s1956_s22 }
  0x74   : > { %p1959_p7 = pnand %p1957_p4, %p1841_p2 }
  0x75   : > { %p1964_p12 = por %p1963_p10, %p1962_p8 }
  0x76   : > { %p1960_p11 = pneg %p1959_p7 }
  0x78   : > { %p1965_p0 = pnand %p1964_p12, %p1960_p11 }
  0x7a   : > { %1968 = shalt.err (!%p1965_p0)
}
  0x7b   : > { %s1969_s28 = scalar_lea.vmem %s2285_s30, 2048  ;;  %s2074_s5 = smov [#allocation13]  }
  0x7c   : > { %p1970_p6 = scmp.ne.s32.totalorder %s2285_s30, %s1969_s28  ;;  %s1974_s13 = sshll.u32 %s2074_s5, 4  ;;  %s1975_s13 = int_to_ptr.vmem [resolvable:$false] %s1974_s13 }
  0x7d   : > { %s1976_s25 = scalar_lea.vmem %s1975_s13, 4096  ;;  %p1977_p1 = scmp.lt.s32.totalorder %s2285_s30, %s1975_s13 }
  0x7e   : > { %p1972_p5 = pnand %p1970_p6, %p1841_p2  ;;  %p1978_p3 = scmp.lt.s32.totalorder %s1976_s25, %s1969_s28 }
  0x80   : > { %p1973_p9 = pneg %p1972_p5  ;;  %p1979_p4 = por %p1978_p3, %p1977_p1 }
  0x82   : > { %p1980_p7 = pnand %p1979_p4, %p1973_p9 }
  0x84   : > { %1983 = shalt.err (!%p1980_p7)
}
  0x85   : > { %1696 = dma.hbm_to_vmem [thread:$0]  (!%p2217_p13), %s2255_s24, 2048, %s2285_s30, %s2223_s27, %s2069_s16, %s2069_s16, %s2070_s12  }
  0x86   : > { %p2542_p2 = scmp.ne.s32.totalorder %s2530_s20, 0 }
  0x87   : > { %p2543_p11 = scmp.eq.s32.totalorder (!%p2542_p2), %s2155_s19, 0 }
  0x88   : > { %407 = sbr.rel (%p2542_p2) target bundleno = 1376 (0x560), region = 60 }
  0x8d   : > { %2025 = dma.done.wait (%p2543_p11), [#allocation4], 256   ;;  %p2544_p8 = pmov %p2543_p11 }
  0x8f   : > { %2027 = vsyncadd (%p2544_p8), [#allocation4], 4294967040  ;;  %p2545_p10 = pmov %p2544_p8 }
  0x90   : > { %p2546_p12 = pmov %p2544_p8 }
  0x91   : > { %2029 = dma.done.wait (%p2545_p10), [#allocation8], 80  }
  0x92   : > { %2031 = vsyncadd (%p2546_p12), [#allocation8], 4294967216  ;;  %p2547_p0 = pmov %p2544_p8 }
  0x94   : > { %2033 = dma.done.wait (%p2547_p0), [#allocation6], 16   ;;  %p2548_p13 = pmov %p2547_p0 }
  0x95   : > { %s425_s20 = sand.u32 1, %s2155_s19   ;;  %s427_s26 = sand.u32 1, %s2054_s14  }
  0x96   : > { %2035 = vsyncadd (%p2548_p13), [#allocation6], 4294967280  ;;  %s1502_s27 = sshll.u32 %s427_s26, 7  ;;  %s426_s24 = scalar_lea.sflag [#allocation12], %s425_s20 }
  0x97   : > { %s2340_s30 = scalar_lea.vmem [#allocation11], %s1502_s27  ;;  %p2549_p6 = scmp.ne.s32.totalorder %s2535_s29, 0 }
  0x99   : > { %2037 = dma.done.wait (%p2549_p6), %s426_s24, 4096  }
  0x9a   : > { %2039 = vsyncadd (%p2549_p6), %s426_s24, 4294963200  ;;  %s2346_s16 = scalar_lea.vmem [#allocation13], %s1502_s27  ;;  %p2550_p5 = pmov %p2547_p0 }
  0x9b   : > { %p2551_p9 = pmov %p2547_p0 }
  0x9c   : > { %2041 = dma.done.wait (%p2550_p5), [#allocation15], 1024  }
  0x9d   : > { %2043 = vsyncadd (%p2551_p9), [#allocation15], 4294966272 }
  0x9e   : > { %447 = sfence }
  0x9f   : > { %p485_p1 = scmp.lt.s32.totalorder %s2155_s19, 1  ;;  %p2552_p3 = scmp.ne.s32.totalorder %s2155_s19, 0 }
  0xa1   : > { %s486_s12 = scalar_select %p485_p1, %s2155_s19, 1 }
  0xa2   : > { %494 = sbr.rel (%p2552_p3) target bundleno = 374 (0x176), region = 92 }
  0xa3   : > { %s1565_s2 = sshll.u32 %s486_s12, 4 }
  0xa4   : > { %s2357_s11 = scalar_lea.vmem %s2515_s7, %s1565_s2 }
  0xa7   : > { %v499_v0 = vld [vmem:[#allocation7] sm:$0xf]  ;;  %vm524_vm0 = vcmask 1043456   ;;  %v1755_v1 = vld [vmem:[%s2508_s0] sm:$0xff]   ;;  %vm517_vm1 = vcmask 64512   ;;  %v1756_v3 = vld [vmem:[%s2508_s0 + $0x8] sm:$0xff]  }
  0xa8   : > { %1645 = vmatprep.subr.msk.bf16.mxu0 %vm524_vm0, %v499_v0  ;;  %v526_v2 = vsel %vm524_vm0, %v499_v0, 0  ;;  %1613 = vmatprep.mubr.msk.bf16.mxu0 %vm517_vm1, %v1755_v1  ;;  %v1508_v4 = vld [vmem:[#allocation9] ss:$0 sm:$0xff] }
  0xa9   : > { %1612 = vmatpush3.bf16.msra.mxu0 %v526_v2 }
  0xac   : > { %1614 = vmatmul.mubr.msk.bf16.vlgmr.msra.gmra.mxu0 %vm517_vm1, %v1756_v3 }
 0x16c   : > { %v1615_v5 = vpop.f32.mrf.mxu0 }
 0x16d   : > { %v571_v6 = vadd.f32 %v1615_v5, %v1508_v4 }
 0x16e   : > { %v562_v7 = vpop.f32.mrf.mxu0 }
 0x16f   : > { %579 = vst [vmem:[#allocation2 + $0x18] sm:$0xff] %v571_v6  ;;  %v563_v8 = vadd.f32 %v1508_v4, %v562_v7 }
 0x170   : > { %v1616_v9 = vpop.f32.mrf.mxu0 }
 0x171   : > { %577 = vst [vmem:[#allocation2 + $0x10] sm:$0xff] %v563_v8  ;;  %v574_v10 = vadd.f32 %v1616_v9, %v1508_v4 }
 0x172   : > { %v565_v11 = vpop.f32.mrf.mxu0 }
 0x173   : > { %580 = vst [vmem:[#allocation2 + $0x8] sm:$0xff] %v574_v10  ;;  %v566_v12 = vadd.f32 %v1508_v4, %v565_v11 }
 0x175   : > { %578 = vst [vmem:[#allocation2] sm:$0xff] %v566_v12 }
 0x176 PF: > { %v2367_v13 = vld [vmem:[#allocation2 + $0x18] sm:$0xff]  ;;  %vm605_vm2 = vcmask 261120   ;;  %v1757_v19 = vld [vmem:[#allocation3] sm:$0xff]   ;;  %v1759_v20 = vld [vmem:[%s2340_s30 + $0x74] ss:$8 sps:$4 sm:$0xff]   ;;  %v2075_v37 = vmov 0   ;;  %v821_v5 = vlaneseq }
 0x177   : > { %1621 = vmatprep.mubr.msk.bf16.mxu0 %vm605_vm2, %v1757_v19  ;;  %v1761_v21 = vld [vmem:[%s2340_s30 + $0x70] ss:$8 sps:$4 sm:$0xff]   ;;  %v1762_v22 = vld [vmem:[%s2340_s30 + $0x64] ss:$8 sps:$4 sm:$0xff]   ;;  %768 = vmatprep.subr.bf16.mxu1 %v1759_v20  ;;  %v1764_v24 = vld [vmem:[%s2340_s30 + $0x60] ss:$8 sps:$4 sm:$0xff]  }
 0x178   : > { %v2371_v15 = vld [vmem:[#allocation2 + $0x10] sm:$0xff]  ;;  %v1758_v23 = vld [vmem:[#allocation3 + $0x8] sm:$0xff]   ;;  %769 = vmatpush1.bf16.msra.mxu1 %v1761_v21  ;;  %v1768_v27 = vld [vmem:[%s2340_s30 + $0x44] ss:$8 sps:$4 sm:$0xff]   ;;  %800 = vmatprep.mubr.bf16.mxu1 %v2075_v37  ;;  %s585_s18 = sld [smem:[#allocation10 + %s2155_s19]]  ;;  %v2418_v6 = vshrl.u32 %v821_v5, 7 }
 0x179   : > { %770 = vmatprep.subr.bf16.mxu1 %v1762_v22  ;;  %v1765_v25 = vld [vmem:[%s2340_s30 + $0x54] ss:$8 sps:$4 sm:$0xff]   ;;  %v1767_v26 = vld [vmem:[%s2340_s30 + $0x50] ss:$8 sps:$4 sm:$0xff]   ;;  %v1770_v28 = vld [vmem:[%s2340_s30 + $0x40] ss:$8 sps:$4 sm:$0xff]  }
 0x17a   : > { %v2369_v14 = vld [vmem:[#allocation2 + $0x8] sm:$0xff]  ;;  %v1774_v31 = vld [vmem:[%s2340_s30 + $0x24] ss:$8 sps:$4 sm:$0xff]   ;;  %v1776_v32 = vld [vmem:[%s2340_s30 + $0x20] ss:$8 sps:$4 sm:$0xff]   ;;  %v2421_v7 = vsub.s32 0, %v2418_v6 }
 0x17b   : > { %v594_v16 = vpack.c.bf16 %v2369_v14, %v2367_v13  ;;  %v1771_v29 = vld [vmem:[%s2340_s30 + $0x34] ss:$8 sps:$4 sm:$0xff]   ;;  %v1773_v30 = vld [vmem:[%s2340_s30 + $0x30] ss:$8 sps:$4 sm:$0xff]   ;;  %v1780_v35 = vld [vmem:[%s2340_s30 + $0x4] ss:$8 sps:$4 sm:$0xff]  }
 0x17c   : > { %v2375_v17 = vld [vmem:[#allocation2] sm:$0xff]  ;;  %771 = vmatpush1.bf16.msra.mxu1 %v1764_v24  ;;  %v1777_v33 = vld [vmem:[%s2340_s30 + $0x14] ss:$8 sps:$4 sm:$0xff]   ;;  %v1789_v59 = vld [vmem:[%s2346_s16 + $0x60] sm:$0xff]   ;;  %p1549_p4 = scmp.ne.s32.totalorder %s2155_s19, 1 }
 0x17d   : > { %v593_v18 = vpack.c.bf16 %v2375_v17, %v2371_v15  ;;  %1617 = vmatprep.subr.bf16.mxu0 %v594_v16  ;;  %772 = vmatprep.subr.bf16.mxu1 %v1765_v25  ;;  %v1779_v34 = vld [vmem:[%s2340_s30 + $0x10] ss:$8 sps:$4 sm:$0xff]   ;;  %v1782_v36 = vld [vmem:[%s2340_s30] ss:$8 sps:$4 sm:$0xff]  }
 0x17e   : > { %1618 = vmatpush3.bf16.msra.mxu0 %v594_v16  ;;  %s586_s28 = sadd.f32 1.0, %s585_s18  ;;  %v1783_v53 = vld [vmem:[%s2346_s16 + $0x78] sm:$0xff]   ;;  %v1785_v55 = vld [vmem:[%s2346_s16 + $0x70] sm:$0xff]   ;;  %v1787_v57 = vld [vmem:[%s2346_s16 + $0x68] sm:$0xff]  }
 0x17f   : > { %1619 = vmatprep.subr.bf16.mxu0 %v593_v18  ;;  %v1784_v54 = vld [vmem:[%s2346_s16 + $0x38] sm:$0xff]   ;;  %v1786_v56 = vld [vmem:[%s2346_s16 + $0x30] sm:$0xff]   ;;  %v1788_v58 = vld [vmem:[%s2346_s16 + $0x28] sm:$0xff]  }
 0x180   : > { %773 = vmatpush1.bf16.msra.mxu1 %v1767_v26  ;;  %v661_v39 = vstv %s586_s28  ;;  %v1790_v60 = vld [vmem:[%s2346_s16 + $0x20] sm:$0xff]   ;;  %v1791_v61 = vld [vmem:[%s2346_s16 + $0x58] sm:$0xff]   ;;  %v1793_v63 = vld [vmem:[%s2346_s16 + $0x50] sm:$0xff]  }
 0x181   : > { %774 = vmatprep.subr.bf16.mxu1 %v1768_v27  ;;  %v662_v41 = vmul.f32 %v661_v39, %v2371_v15  ;;  %v663_v42 = vmul.f32 %v661_v39, %v2375_v17  ;;  %v665_v47 = vmul.f32 %v661_v39, %v2369_v14  ;;  %v664_v49 = vmul.f32 %v661_v39, %v2367_v13  ;;  %v1792_v62 = vld [vmem:[%s2346_s16 + $0x18] sm:$0xff]   ;;  %v1794_v0 = vld [vmem:[%s2346_s16 + $0x10] sm:$0xff]   ;;  %v1795_v1 = vld [vmem:[%s2346_s16 + $0x48] sm:$0xff]  }
 0x182   : > { %1620 = vmatpush3.bf16.msra.mxu0 %v593_v18  ;;  %v1796_v2 = vld [vmem:[%s2346_s16 + $0x8] sm:$0xff]   ;;  %v1797_v3 = vld [vmem:[%s2346_s16 + $0x40] sm:$0xff]  }
 0x183   : > { %1573 = vmatprep.subr.bf16.mxu0 %v1783_v53  ;;  %v1798_v4 = vld [vmem:[%s2346_s16] sm:$0xff]  }
 0x184   : > { %775 = vmatpush1.bf16.msra.mxu1 %v1770_v28 }
 0x185   : > { %1622 = vmatmul.mubr.msk.bf16.vlgmr.msra.gmra.mxu0 %vm605_vm2, %v1758_v23  ;;  %776 = vmatprep.subr.bf16.mxu1 %v1771_v29 }
 0x186   : > { %1574 = vmatpush3.bf16.msra.mxu0 %v1784_v54 }
 0x187   : > { %1575 = vmatprep.subr.bf16.mxu0 %v1785_v55 }
 0x188   : > { %777 = vmatpush1.bf16.msra.mxu1 %v1773_v30 }
 0x189   : > { %778 = vmatprep.subr.bf16.mxu1 %v1774_v31 }
 0x18a   : > { %1576 = vmatpush3.bf16.msra.mxu0 %v1786_v56 }
 0x18b   : > { %1577 = vmatprep.subr.bf16.mxu0 %v1787_v57 }
 0x18c   : > { %779 = vmatpush1.bf16.msra.mxu1 %v1776_v32 }
 0x18d   : > { %780 = vmatprep.subr.bf16.mxu1 %v1777_v33 }
 0x18e   : > { %1578 = vmatpush3.bf16.msra.mxu0 %v1788_v58 }
 0x18f   : > { %1579 = vmatprep.subr.bf16.mxu0 %v1789_v59 }
 0x190   : > { %781 = vmatpush1.bf16.msra.mxu1 %v1779_v34 }
 0x191   : > { %782 = vmatprep.subr.bf16.mxu1 %v1780_v35 }
 0x192   : > { %1580 = vmatpush3.bf16.msra.mxu0 %v1790_v60 }
 0x193   : > { %1581 = vmatprep.subr.bf16.mxu0 %v1791_v61 }
 0x194   : > { %783 = vmatpush1.bf16.msra.mxu1 %v1782_v36 }
 0x196   : > { %1582 = vmatpush3.bf16.msra.mxu0 %v1792_v62 }
 0x197   : > { %1583 = vmatprep.subr.bf16.mxu0 %v1793_v63 }
 0x19a   : > { %1584 = vmatpush3.bf16.msra.mxu0 %v1794_v0 }
 0x19b   : > { %1585 = vmatprep.subr.bf16.mxu0 %v1795_v1 }
 0x19e   : > { %1586 = vmatpush3.bf16.msra.mxu0 %v1796_v2 }
 0x19f   : > { %1587 = vmatprep.subr.bf16.mxu0 %v1797_v3 }
 0x1a2   : > { %1588 = vmatpush3.bf16.msra.mxu0 %v1798_v4 }
 0x245   : > { %v1623_v38 = vpop.f32.mrf.mxu0 }
 0x246   : > { %v668_v51 = vadd.f32 %v1623_v38, %v664_v49 }
 0x247   : > { %v646_v40 = vpop.f32.mrf.mxu0 }
 0x248   : > { %v666_v45 = vadd.f32 %v662_v41, %v646_v40 }
 0x249   : > { %v1624_v43 = vpop.f32.mrf.mxu0 }
 0x24a   : > { %v669_v50 = vadd.f32 %v1624_v43, %v665_v47 }
 0x24b   : > { %v649_v44 = vpop.f32.mrf.mxu0 }
 0x24c   : > { %v667_v46 = vadd.f32 %v663_v42, %v649_v44  ;;  %v671_v52 = vpack.c.bf16 %v669_v50, %v668_v51 }
 0x24e   : > { %v670_v48 = vpack.c.bf16 %v667_v46, %v666_v45 }
 0x250   : > { %801 = vmatmul.mubr.bf16.vlgmr.msra.gmra.mxu1 %v670_v48 }
 0x251   : > { %810 = vmatprep.mubr.bf16.mxu1 %v2075_v37 }
 0x258   : > { %811 = vmatmul.mubr.bf16.gmra.mxu1 %v671_v52 }
 0x310   : > { %v2423_v8 = vpop.f32.mrf.mxu1 }
 0x311   : > { %v824_v9 = vrot.slane %v2423_v8, %v2421_v7 }
 0x312   : > { %v2427_v10 = vpop.f32.mrf.mxu1 }
 0x313   : > { %v828_v11 = vrot.slane %v2427_v10, %v2421_v7  ;;  %v829_v18 = vsub.f32 %v2423_v8, %v824_v9 }
 0x314   : > { %v2431_v12 = vpop.f32.mrf.mxu1 }
 0x315   : > { %v831_v16 = vsub.f32 %v2431_v12, %v824_v9  ;;  %v830_v22 = vsub.f32 %v2427_v10, %v828_v11  ;;  %v855_v25 = vmul.f32 %v829_v18, %v829_v18 }
 0x316   : > { %v2435_v19 = vpop.f32.mrf.mxu1 }
 0x317   : > { %v832_v20 = vsub.f32 %v2435_v19, %v828_v11  ;;  %v857_v21 = vmul.f32 %v831_v16, %v831_v16  ;;  %v837_v28 = vadd.f32 %v831_v16, %v829_v18  ;;  %v856_v32 = vmul.f32 %v830_v22, %v830_v22 }
 0x318   : > { %v2439_v23 = vpop.f32.mrf.mxu1 }
 0x319   : > { %v833_v24 = vsub.f32 %v2439_v23, %v824_v9  ;;  %v858_v26 = vmul.f32 %v832_v20, %v832_v20  ;;  %v863_v31 = vadd.f32 %v857_v21, %v855_v25  ;;  %v846_v34 = vadd.f32 %v832_v20, %v830_v22 }
 0x31a   : > { %v2442_v27 = vpop.f32.mrf.mxu1 }
 0x31b   : > { %v859_v29 = vmul.f32 %v833_v24, %v833_v24  ;;  %v834_v30 = vsub.f32 %v2442_v27, %v828_v11  ;;  %v838_v35 = vadd.f32 %v837_v28, %v833_v24  ;;  %v872_v38 = vadd.f32 %v858_v26, %v856_v32 }
 0x31c   : > { %v2445_v33 = vpop.f32.mrf.mxu1 }
 0x31d   : > { %v860_v36 = vmul.f32 %v834_v30, %v834_v30  ;;  %v835_v37 = vsub.f32 %v2445_v33, %v824_v9  ;;  %v864_v39 = vadd.f32 %v863_v31, %v859_v29  ;;  %v847_v41 = vadd.f32 %v846_v34, %v834_v30 }
 0x31e   : > { %v2448_v40 = vpop.f32.mrf.mxu1 }
 0x31f   : > { %v839_v42 = vadd.f32 %v838_v35, %v835_v37  ;;  %v861_v43 = vmul.f32 %v835_v37, %v835_v37  ;;  %v836_v44 = vsub.f32 %v2448_v40, %v828_v11  ;;  %v873_v45 = vadd.f32 %v872_v38, %v860_v36  ;;  %v2452_v35 = vld [vmem:[%s2357_s11] sm:$0xff] }
 0x321   : > { %v840_v46 = vrot.slane %v839_v42, 4  ;;  %v865_v47 = vadd.f32 %v864_v39, %v861_v43  ;;  %v848_v48 = vadd.f32 %v847_v41, %v836_v44  ;;  %v862_v49 = vmul.f32 %v836_v44, %v836_v44  ;;  %v588_v39 = vld [vmem:[%s2357_s11 + $0x8] sm:$0xff] }
 0x323   : > { %v841_v50 = vadd.f32 %v840_v46, %v839_v42  ;;  %v866_v51 = vrot.slane %v865_v47, 4  ;;  %v849_v52 = vrot.slane %v848_v48, 4  ;;  %v874_v53 = vadd.f32 %v873_v45, %v862_v49 }
 0x325   : > { %v842_v54 = vrot.slane %v841_v50, 2  ;;  %v867_v55 = vadd.f32 %v866_v51, %v865_v47  ;;  %v850_v56 = vadd.f32 %v849_v52, %v848_v48  ;;  %v875_v57 = vrot.slane %v874_v53, 4 }
 0x326   : > { %v927_v47 = vsub.s32 1, %v2418_v6 }
 0x327   : > { %v843_v58 = vadd.f32 %v842_v54, %v841_v50  ;;  %v868_v59 = vrot.slane %v867_v55, 2  ;;  %v851_v60 = vrot.slane %v850_v56, 2  ;;  %v876_v61 = vadd.f32 %v875_v57, %v874_v53 }
 0x329   : > { %v844_v62 = vrot.slane %v843_v58, 1  ;;  %v869_v63 = vadd.f32 %v868_v59, %v867_v55  ;;  %v852_v0 = vadd.f32 %v851_v60, %v850_v56  ;;  %v877_v1 = vrot.slane %v876_v61, 2 }
 0x32b   : > { %v845_v2 = vadd.f32 %v844_v62, %v843_v58  ;;  %v870_v3 = vrot.slane %v869_v63, 1  ;;  %v853_v4 = vrot.slane %v852_v0, 1  ;;  %v878_v5 = vadd.f32 %v877_v1, %v876_v61 }
 0x32d   : > { %v871_v9 = vadd.f32 %v870_v3, %v869_v63  ;;  %v881_v11 = vmul.f32 0.03125, %v845_v2  ;;  %v854_v16 = vadd.f32 %v853_v4, %v852_v0  ;;  %v879_v18 = vrot.slane %v878_v5, 1 }
 0x32f   : > { %v883_v20 = vmul.f32 0.03125, %v871_v9  ;;  %v885_v21 = vmul.f32 %v881_v11, %v881_v11  ;;  %v880_v22 = vadd.f32 %v879_v18, %v878_v5  ;;  %v882_v24 = vmul.f32 0.03125, %v854_v16 }
 0x330   : > { %v891_v37 = vadd.f32 %v881_v11, %v2423_v8 }
 0x331   : > { %v887_v25 = vsub.f32 %v883_v20, %v885_v21  ;;  %v884_v26 = vmul.f32 0.03125, %v880_v22  ;;  %v886_v28 = vmul.f32 %v882_v24, %v882_v24  ;;  %v892_v43 = vadd.f32 %v882_v24, %v2427_v10 }
 0x333   : > { %v889_v29 = vmax.f32 %v887_v25, 0.0  ;;  %v888_v30 = vsub.f32 %v884_v26, %v886_v28 }
 0x335   : > { %v893_v31 = vadd.f32 1e-05, %v889_v29  ;;  %v890_v32 = vmax.f32 %v888_v30, 0.0 }
 0x337   : > { %1799 = vrsqrt.f32 %v893_v31  ;;  %v894_v34 = vadd.f32 1e-05, %v890_v32 }
 0x339   : > { %1801 = vrsqrt.f32 %v894_v34 }
 0x344   : > { %v1800_v36 = vpop.eup %1799 }
 0x345   : > { %v897_v38 = vmul.f32 %v1800_v36, %v2452_v35 }
 0x346   : > { %v1802_v41 = vpop.eup %1801 }
 0x347   : > { %v899_v42 = vmul.f32 %v897_v38, %v891_v37  ;;  %v898_v44 = vmul.f32 %v1802_v41, %v588_v39  ;;  %v912_v46 = vrot.slane %v897_v38, %v2421_v7 }
 0x349   : > { %v903_v45 = vrot.slane %v899_v42, 7  ;;  %v900_v48 = vmul.f32 %v898_v44, %v892_v43  ;;  %v916_v50 = vrot.slane %v898_v44, %v2421_v7  ;;  %v917_v53 = vmul.f32 %v912_v46, %v2423_v8 }
 0x34a   : > { %v919_v54 = vmul.f32 %v912_v46, %v2431_v12  ;;  %v921_v11 = vmul.f32 %v912_v46, %v2439_v23 }
 0x34b   : > { %v907_v49 = vsub.f32 %v2452_v35, %v903_v45  ;;  %v904_v51 = vrot.slane %v900_v48, 7  ;;  %v924_v56 = vmul.f32 %v916_v50, %v2448_v40  ;;  %v918_v60 = vmul.f32 %v916_v50, %v2427_v10 }
 0x34c   : > { %v920_v61 = vmul.f32 %v916_v50, %v2435_v19  ;;  %v922_v62 = vmul.f32 %v916_v50, %v2442_v27  ;;  %v923_v40 = vmul.f32 %v912_v46, %v2445_v33 }
 0x34d   : > { %v928_v52 = vrot.slane %v907_v49, %v927_v47  ;;  %v908_v55 = vsub.f32 %v588_v39, %v904_v51 }
 0x34f   : > { %v933_v57 = vadd.f32 %v928_v52, %v917_v53  ;;  %v935_v58 = vadd.f32 %v928_v52, %v919_v54  ;;  %v932_v59 = vrot.slane %v908_v55, %v927_v47  ;;  %v939_v10 = vadd.f32 %v928_v52, %v923_v40 }
 0x350   : > { %v937_v19 = vadd.f32 %v928_v52, %v921_v11 }
 0x351   : > { %v940_v63 = vadd.f32 %v932_v59, %v924_v56  ;;  %v934_v0 = vadd.f32 %v932_v59, %v918_v60  ;;  %v936_v1 = vadd.f32 %v932_v59, %v920_v61  ;;  %v938_v2 = vadd.f32 %v932_v59, %v922_v62 }
 0x352   : > { %v941_v3 = vmax.f32 %v933_v57, 0.0  ;;  %v943_v8 = vmax.f32 %v935_v58, 0.0  ;;  %v947_v20 = vmax.f32 %v939_v10, 0.0  ;;  %v945_v21 = vmax.f32 %v937_v19, 0.0 }
 0x353   : > { %v948_v4 = vmax.f32 %v940_v63, 0.0  ;;  %v942_v12 = vmax.f32 %v934_v0, 0.0  ;;  %v944_v5 = vmax.f32 %v936_v1, 0.0  ;;  %v946_v9 = vmax.f32 %v938_v2, 0.0 }
 0x354   : > { %v949_v18 = vpack.c.bf16 %v943_v8, %v941_v3  ;;  %v951_v22 = vpack.c.bf16 %v947_v20, %v945_v21  ;;  %v1187_v19 = vsub.s32 3, %v2418_v6 }
 0x355   : > { %v950_v16 = vpack.c.bf16 %v944_v5, %v942_v12  ;;  %v952_v27 = vpack.c.bf16 %v948_v4, %v946_v9  ;;  %v1179_v9 = vsub.s32 2, %v2418_v6 }
 0x357   : > { %1113 = vmatprep.mubr.bf16.mxu0 %v950_v16 }
 0x358   : > { %1114 = vmatmul.mubr.bf16.vlgmr.msra.gmra.mxu0 %v949_v18 }
 0x359   : > { %1121 = vmatprep.mubr.bf16.mxu0 %v952_v27 }
 0x360   : > { %1122 = vmatmul.mubr.bf16.gmra.mxu0 %v951_v22 }
 0x418   : > { %v1589_v24 = vpop.f32.mrf.mxu0 }
 0x41a   : > { %v1590_v25 = vpop.f32.mrf.mxu0 }
 0x41b   : > { %v1591_v26 = vadd.f32 %v1590_v25, %v1589_v24 }
 0x41c   : > { %v1592_v28 = vpop.f32.mrf.mxu0 }
 0x41d   : > { %v1133_v33 = vrot.slane %v1591_v26, %v2421_v7 }
 0x41e   : > { %v1593_v29 = vpop.f32.mrf.mxu0 }
 0x41f   : > { %v1594_v23 = vadd.f32 %v1593_v29, %v1592_v28  ;;  %v1134_v34 = vsub.f32 %v1591_v26, %v1133_v33 }
 0x420   : > { %v1595_v30 = vpop.f32.mrf.mxu0 }
 0x421   : > { %v1135_v31 = vsub.f32 %v1594_v23, %v1133_v33  ;;  %v1147_v43 = vmul.f32 %v1134_v34, %v1134_v34 }
 0x422   : > { %v1596_v32 = vpop.f32.mrf.mxu0 }
 0x423   : > { %v1597_v36 = vadd.f32 %v1596_v32, %v1595_v30  ;;  %v1148_v38 = vmul.f32 %v1135_v31, %v1135_v31  ;;  %v1138_v42 = vadd.f32 %v1135_v31, %v1134_v34 }
 0x424   : > { %v1598_v37 = vpop.f32.mrf.mxu0 }
 0x425   : > { %v1136_v39 = vsub.f32 %v1597_v36, %v1133_v33  ;;  %v1151_v46 = vadd.f32 %v1148_v38, %v1147_v43 }
 0x426   : > { %v1599_v41 = vpop.f32.mrf.mxu0 }
 0x427   : > { %v1149_v44 = vmul.f32 %v1136_v39, %v1136_v39  ;;  %v1600_v45 = vadd.f32 %v1599_v41, %v1598_v37  ;;  %v1139_v47 = vadd.f32 %v1138_v42, %v1136_v39 }
 0x429   : > { %v1137_v48 = vsub.f32 %v1600_v45, %v1133_v33  ;;  %v1152_v49 = vadd.f32 %v1151_v46, %v1149_v44 }
 0x42b   : > { %v1140_v50 = vadd.f32 %v1139_v47, %v1137_v48  ;;  %v1150_v7 = vmul.f32 %v1137_v48, %v1137_v48 }
 0x42d   : > { %v1141_v51 = vrot.slane %v1140_v50, 4  ;;  %v1153_v52 = vadd.f32 %v1152_v49, %v1150_v7 }
 0x42f   : > { %v1142_v53 = vadd.f32 %v1141_v51, %v1140_v50  ;;  %v1154_v54 = vrot.slane %v1153_v52, 4 }
 0x431   : > { %v1143_v55 = vrot.slane %v1142_v53, 2  ;;  %v1155_v56 = vadd.f32 %v1154_v54, %v1153_v52 }
 0x433   : > { %v1144_v57 = vadd.f32 %v1143_v55, %v1142_v53  ;;  %v1156_v58 = vrot.slane %v1155_v56, 2 }
 0x435   : > { %v1145_v59 = vrot.slane %v1144_v57, 1  ;;  %v1157_v60 = vadd.f32 %v1156_v58, %v1155_v56 }
 0x437   : > { %v1146_v61 = vadd.f32 %v1145_v59, %v1144_v57  ;;  %v1158_v62 = vrot.slane %v1157_v60, 1 }
 0x439   : > { %v1159_v63 = vadd.f32 %v1158_v62, %v1157_v60  ;;  %v1160_v0 = vmul.f32 0.03125, %v1146_v61 }
 0x43b   : > { %v1161_v1 = vmul.f32 0.03125, %v1159_v63  ;;  %v1162_v2 = vmul.f32 %v1160_v0, %v1160_v0  ;;  %v1165_v40 = vadd.f32 %v1591_v26, %v1160_v0 }
 0x43d   : > { %v1163_v3 = vsub.f32 %v1161_v1, %v1162_v2 }
 0x43f   : > { %v1164_v8 = vmax.f32 %v1163_v3, 0.0 }
 0x441   : > { %v1166_v4 = vadd.f32 1e-05, %v1164_v8 }
 0x443   : > { %1803 = vrsqrt.f32 %v1166_v4 }
 0x450   : > { %v1804_v12 = vpop.eup %1803 }
 0x451   : > { %v1168_v5 = vmul.f32 %v1804_v12, %v2452_v35 }
 0x453   : > { %v1170_v11 = vrot.slane %v1168_v5, 2  ;;  %v1180_v10 = vrot.slane %v1168_v5, %v1179_v9 }
 0x455   : > { %v1172_v16 = vmul.f32 %v1170_v11, %v1165_v40  ;;  %v1181_v20 = vmul.f32 %v1591_v26, %v1180_v10  ;;  %v1182_v21 = vmul.f32 %v1594_v23, %v1180_v10  ;;  %v1183_v22 = vmul.f32 %v1597_v36, %v1180_v10 }
 0x456   : > { %v1184_v24 = vmul.f32 %v1600_v45, %v1180_v10 }
 0x457   : > { %v1174_v18 = vrot.slane %v1172_v16, 5 }
 0x459   : > { %v1176_v27 = vsub.f32 %v2452_v35, %v1174_v18 }
 0x45b   : > { %v1188_v25 = vrot.slane %v1176_v27, %v1187_v19 }
 0x45d   : > { %v1189_v28 = vadd.f32 %v1188_v25, %v1181_v20  ;;  %v1190_v29 = vadd.f32 %v1188_v25, %v1182_v21  ;;  %v1191_v33 = vadd.f32 %v1188_v25, %v1183_v22  ;;  %v1192_v30 = vadd.f32 %v1188_v25, %v1184_v24 }
 0x45f   : > { %v1193_v31 = vmax.f32 %v1189_v28, 0.0  ;;  %v1194_v32 = vmax.f32 %v1190_v29, 0.0  ;;  %v1195_v34 = vmax.f32 %v1191_v33, 0.0  ;;  %v1196_v37 = vmax.f32 %v1192_v30, 0.0 }
 0x460   : > { %1208 = sbr.rel (%p1549_p4) target bundleno = 1360 (0x550), region = 96 }
 0x461   : > { %v1197_v38 = vadd.f32 %v1193_v31, %v2371_v15  ;;  %v1198_v39 = vadd.f32 %v1194_v32, %v2375_v17  ;;  %v1199_v6 = vadd.f32 %v1195_v34, %v2367_v13  ;;  %v1200_v35 = vadd.f32 %v1196_v37, %v2369_v14 }
 0x463   : > { %1201 = vst [vmem:[#allocation2 + $0x10] sm:$0xff] %v1197_v38  ;;  %1202 = vst [vmem:[#allocation2] sm:$0xff] %v1198_v39 }
 0x464   : > { %1203 = vst [vmem:[#allocation2 + $0x18] sm:$0xff] %v1199_v6  ;;  %1204 = vst [vmem:[#allocation2 + $0x8] sm:$0xff] %v1200_v35 }
 0x465   : > { %v1805_v26 = vld [vmem:[#allocation14 + $0x38] sm:$0xff]   ;;  %v1806_v23 = vld [vmem:[#allocation14 + $0x30] sm:$0xff]   ;;  %v1807_v36 = vld [vmem:[#allocation14 + $0x28] sm:$0xff]  }
 0x466   : > { %1625 = vmatprep.subr.bf16.mxu0 %v1805_v26  ;;  %v1808_v15 = vld [vmem:[#allocation14 + $0x20] sm:$0xff]   ;;  %v1809_v14 = vld [vmem:[#allocation14 + $0x18] sm:$0xff]   ;;  %v1810_v42 = vld [vmem:[#allocation14 + $0x10] sm:$0xff]  }
 0x467   : > { %1626 = vmatpush3.bf16.msra.mxu0 %v1805_v26  ;;  %v1811_v43 = vld [vmem:[#allocation14 + $0x8] sm:$0xff]   ;;  %v1812_v44 = vld [vmem:[#allocation14] sm:$0xff]  }
 0x468   : > { %1627 = vmatprep.subr.bf16.mxu0 %v1806_v23  ;;  %v1550_v48 = vld [vmem:[%s2517_s9] ss:$0 sm:$0xff] }
 0x46a   : > { %v1209_v17 = vld [vmem:[#allocation2 + $0x10] sm:$0xff]  ;;  %v1210_v13 = vld [vmem:[#allocation2] sm:$0xff] }
 0x46b   : > { %1628 = vmatpush3.bf16.msra.mxu0 %v1806_v23  ;;  %v1213_v41 = vpack.c.bf16 %v1210_v13, %v1209_v17  ;;  %v1211_v45 = vld [vmem:[#allocation2 + $0x18] sm:$0xff]  ;;  %v1212_v46 = vld [vmem:[#allocation2 + $0x8] sm:$0xff] }
 0x46c   : > { %1629 = vmatprep.subr.bf16.mxu0 %v1807_v36  ;;  %v1214_v47 = vpack.c.bf16 %v1212_v46, %v1211_v45 }
 0x46d   : > { %1641 = vmatprep.mubr.bf16.mxu0 %v1213_v41 }
 0x46f   : > { %1630 = vmatpush3.bf16.msra.mxu0 %v1807_v36 }
 0x470   : > { %1631 = vmatprep.subr.bf16.mxu0 %v1808_v15 }
 0x473   : > { %1632 = vmatpush3.bf16.msra.mxu0 %v1808_v15 }
 0x474   : > { %1633 = vmatprep.subr.bf16.mxu0 %v1809_v14 }
 0x477   : > { %1634 = vmatpush3.bf16.msra.mxu0 %v1809_v14 }
 0x478   : > { %1635 = vmatprep.subr.bf16.mxu0 %v1810_v42 }
 0x47b   : > { %1636 = vmatpush3.bf16.msra.mxu0 %v1810_v42 }
 0x47c   : > { %1637 = vmatprep.subr.bf16.mxu0 %v1811_v43 }
 0x47f   : > { %1638 = vmatpush3.bf16.msra.mxu0 %v1811_v43 }
 0x480   : > { %1639 = vmatprep.subr.bf16.mxu0 %v1812_v44 }
 0x483   : > { %1640 = vmatpush3.bf16.msra.mxu0 %v1812_v44 }
 0x486   : > { %1642 = vmatmul.mubr.bf16.vlgmr.msra.gmra.mxu0 %v1214_v47 }
 0x546   : > { %v1643_v49 = vpop.f32.mrf.mxu0 }
 0x547   : > { %v1329_v50 = vadd.f32 %v1643_v49, %v1550_v48 }
 0x548   : > { %v1320_v7 = vpop.f32.mrf.mxu0 }
 0x549   : > { %1337 = vst [vmem:[#allocation16 + $0x10] sm:$0xff] %v1329_v50  ;;  %v1321_v51 = vadd.f32 %v1550_v48, %v1320_v7 }
 0x54a   : > { %v1644_v52 = vpop.f32.mrf.mxu0 }
 0x54b   : > { %1335 = vst [vmem:[#allocation16] sm:$0xff] %v1321_v51  ;;  %v1332_v53 = vadd.f32 %v1644_v52, %v1550_v48 }
 0x54c   : > { %v1323_v54 = vpop.f32.mrf.mxu0 }
 0x54d   : > { %1338 = vst [vmem:[#allocation16 + $0x18] sm:$0xff] %v1332_v53  ;;  %v1324_v55 = vadd.f32 %v1550_v48, %v1323_v54 }
 0x54f   : > { %1336 = vst [vmem:[#allocation16 + $0x8] sm:$0xff] %v1324_v55 }
 0x550 PF: > { %p1708_p7 = scmp.eq.s32.totalorder %s2155_s19, 1  ;;  %s2076_s25 = smov [#allocation16]  }
 0x551   : > { %s1345_s20 = sshll.u32 %s2076_s25, 4  ;;  %s1346_s20 = int_to_ptr.vmem [resolvable:$true] %s1345_s20 }
 0x552   : > { %s1984_s26 = scalar_lea.vmem %s1346_s20, 512  ;;  %p1991_p10 = scmp.lt.s32.totalorder %s1346_s20, %s1346_s20 }
 0x553   : > { %p1985_p2 = scmp.ne.s32.totalorder %s1346_s20, %s1984_s26  ;;  %p1992_p12 = scmp.lt.s32.totalorder %s1984_s26, %s1984_s26 }
 0x555   : > { %p1986_p11 = pnand %p1985_p2, %p1708_p7  ;;  %p1993_p0 = por %p1992_p12, %p1991_p10 }
 0x557   : > { %p1987_p8 = pneg %p1986_p11 }
 0x559   : > { %p1994_p13 = pnand %p1993_p0, %p1987_p8 }
 0x55b   : > { %1997 = shalt.err (!%p1994_p13)
}
 0x55c   : > { %s2077_s27 = smov 128   ;;  %s2078_s24 = smov 8  }
 0x55d   : > { %1671 = dma.vmem_to_hbm [thread:$0]  (%p1708_p7), %s1346_s20, 512, %s2518_s10, [#allocation5], %s2077_s27, %s2077_s27, %s2078_s24  }
 0x55e   : > { %2045 = dma.done.wait (%p1708_p7), [#allocation5], 512  }
 0x55f   : > { %2047 = vsyncadd (%p1708_p7), [#allocation5], 4294966784 }
 0x560 PF: > { %s2553_s16 = sld [smem:[#allocation24_spill]]  ;;  %s2556_s13 = smov %s2054_s14 }
 0x561   : > { %s2554_s12 = sld [smem:[#allocation23_spill]] }
 0x562   : > { %s2555_s15 = sld [smem:[#allocation25_spill]] }
 0x566   : > { %p25_p6 = scmp.ge.s32.totalorder %s2553_s16, 4  }
 0x567   : > { %s2557_s14 = smov %s2554_s12 }
 0x568   :  { %27 = sbr.rel (!%p25_p6) target bundleno = 11 (0xb), region = 141 }
 0x56d   :  { %1361 = vsyncpa [#allocation4], 1 }
 0x56e   :  { %1363 = vsyncpa [#allocation4 + $0x1], 1 }
 0x56f   :  { %1364 = vsyncpa [#allocation8], 1 }
 0x570   :  { %1365 = vsyncpa [#allocation12], 1 }
 0x571   :  { %1367 = vsyncpa [#allocation12 + $0x1], 1 }
 0x572   :  { %1368 = vsyncpa [#allocation15], 1 }
 0x573   :  { %1369 = vsyncpa [#allocation5], 1 }
 0x574   :  { %1371 = vsyncpa [#allocation5 + $0x1], 1 }
 0x575   :  { %1372 = vsyncpa [#allocation6], 1 }
 0x576   :  { %1374 = vsyncpa [#allocation6 + $0x1], 1 }

// kernel: tpu_custom_call.1
= control target key start
LH: loop header
LB: loop body
LE: loop exit
PB: predicated region body
PF: predicated region fallthrough
CT: control target
= control target key end

     0   :  { %s2508_s0 = inlined_call_operand.vmem [shape: bf16[32,8], index: 0, kind: input, shape index: {}]   ;;  %s2509_s1 = inlined_call_operand.hbm [shape: bf16[32,32], index: 1, kind: input, shape index: {}]   ;;  %s2510_s2 = inlined_call_operand.hbm [shape: bf16[8,128], index: 2, kind: input, shape index: {}]   ;;  %s2511_s3 = inlined_call_operand.hbm [shape: f32[1,128], index: 3, kind: input, shape index: {}]   ;;  %s2512_s4 = inlined_call_operand.hbm [shape: f32[2], index: 4, kind: input, shape index: {}]   ;;  %s2513_s5 = inlined_call_operand.hbm [shape: bf16[2,128,256], index: 5, kind: input, shape index: {}]   ;;  %s2514_s6 = inlined_call_operand.hbm [shape: bf16[2,256,128], index: 6, kind: input, shape index: {}]   ;;  %s2515_s7 = inlined_call_operand.vmem [shape: f32[2,8,256], index: 7, kind: input, shape index: {}]   ;;  %s2516_s8 = inlined_call_operand.hbm [shape: bf16[128,128], index: 8, kind: input, shape index: {}]   ;;  %s2517_s9 = inlined_call_operand.vmem [shape: f32[1,128], index: 9, kind: input, shape index: {}]   ;;  %s2518_s10 = inlined_call_operand.hbm [shape: f32[32,128], index: 10, kind: output, shape index: {}]  }
   0x1   :  { %2527 = sst [smem:[#allocation26_spill]] %s2510_s2 }
   0x2   :  { %2528 = sst [smem:[#allocation27_spill]] %s2513_s5 }
   0x3   :  { %15 = vsyncpa [#allocation4], 0 }
   0x4   :  { %16 = vsyncpa [#allocation8], 0 }
   0x5   :  { %17 = vsyncpa [#allocation6], 0 }
   0x6   :  { %18 = vsyncpa [#allocation12], 0 }
   0x7   :  { %20 = vsyncpa [#allocation12 + $0x1], 0 }
   0x8   :  { %21 = vsyncpa [#allocation15], 0 }
   0x9   :  { %22 = vsyncpa [#allocation5], 0  ;;  %s2134_s13 = smov 0   ;;  %s2136_s14 = smov 0  }
   0xa   :  { %s2138_s15 = smov 0   ;;  %s2140_s16 = smov 0  }
   0xb LB: > { %2529 = sst [smem:[#allocation23_spill]] %s2058_s15  ;;  %s2064_s17 = smov [#allocation7]   ;;  %s2062_s16 = sphi %s2140_s16, %s2553_s16   ;;  %s2058_s15 = sphi %s2138_s15, %s2555_s15   ;;  %s2054_s14 = sphi %s2136_s14, %s2557_s14   ;;  %s2050_s13 = sphi %s2134_s13, %s2556_s13  }
   0xc   : > { %s308_s18 = sshll.u32 %s2064_s17, 4  ;;  %s2155_s19 = sadd.s32 4294967295, %s2062_s16   ;;  %s309_s18 = int_to_ptr.vmem [resolvable:$true] %s308_s18 }
   0xd   : > { %p1484_p0 = scmp.ge.s32.totalorder %s2062_s16, 1  ;;  %p2520_p1 = scmp.eq.s32.totalorder %s2155_s19, 0 }
   0xe   : > { %p279_p2 = scmp.lt.s32.totalorder %s2062_s16, 3  ;;  %s2174_s22 = sadd.s32 1, %s2062_s16  }
   0xf   : > { %2532 = sst [smem:[#allocation24_spill]] %s2174_s22  ;;  %s140_s23 = sadd.s32 1, %s2058_s15 }
  0x10   : > { %p2161_p4 = pnand %p1484_p0, %p279_p2  ;;  %s137_s24 = ssub.s32 %s2062_s16, %s2174_s22 }
  0x11   : > { %s1824_s25 = scalar_lea.vmem %s309_s18, 64  ;;  %p1832_p11 = scmp.lt.s32.totalorder %s309_s18, %s309_s18 }
  0x12   : > { %s2530_s20 = scalar_select %p2161_p4, 1, 0 }
  0x13   : > { %p1674_p5 = pneg %p2161_p4  ;;  %p1825_p8 = scmp.ne.s32.totalorder %s309_s18, %s1824_s25 }
  0x14   : > { %p1833_p12 = scmp.lt.s32.totalorder %s1824_s25, %s1824_s25 }
  0x15   : > { %p2169_p6 = pnand %p1674_p5, %p2520_p1 }
  0x16   : > { %p1834_p13 = por %p1833_p12, %p1832_p11 }
  0x17   : > { %p2521_p7 = pneg %p2169_p6 }
  0x19   : > { %p1827_p9 = pnand %p1825_p8, %p2521_p7 }
  0x1b   : > { %p1828_p10 = pneg %p1827_p9 }
  0x1d   : > { %p1835_p0 = pnand %p1834_p13, %p1828_p10 }
  0x1f   : > { %1838 = shalt.err (!%p1835_p0)
}
  0x20   : > { %s2533_s2 = sld [smem:[#allocation26_spill]]  ;;  %p138_p2 = scmp.eq.s32.totalorder %s137_s24, 0 }
  0x21   : > { %p147_p5 = scmp.ne.s32.totalorder %s2058_s15, %s2054_s14  ;;  %p148_p8 = scmp.eq.s32.totalorder %s2062_s16, 0 }
  0x22   : > { %p153_p9 = scmp.ne.s32.totalorder %s2054_s14, %s2050_s13  ;;  %p1702_p12 = scmp.lt.s32.totalorder %s2062_s16, 2 }
  0x23   : > { %s2195_s28 = scalar_select %p138_p2, %s2058_s15, %s140_s23  }
  0x24   : > { %p149_p10 = por %p148_p8, %p147_p5  ;;  %p2199_p11 = por %p2520_p1, %p153_p9 }
  0x25   : > { %2534 = sst [smem:[#allocation25_spill]] %s2195_s28  ;;  %s355_s30 = sand.u32 1, %s2062_s16  }
  0x26   : > { %1680 = dma.hbm_to_vmem [thread:$0]  (!%p2169_p6), %s2533_s2, 64, %s309_s18, [#allocation8]  }
  0x27   : > { %s2535_s29 = scalar_select %p2199_p11, 1, 0 }
  0x28   : > { %s357_s11 = sand.u32 1, %s2058_s15   ;;  %s2519_s17 = sshll.u32 %s2062_s16, 11 }
  0x29   : > { %s2206_s12 = sshll.u32 %s357_s11, 7  ;;  %s2536_s5 = sld [smem:[#allocation27_spill]] }
  0x2a   : > { %s359_s23 = scalar_lea.vmem [#allocation11], %s2206_s12  ;;  %p2217_p13 = pnand %p1702_p12, %p149_p10 }
  0x2b   : > { %s366_s25 = sshll.u32 %s359_s23, 4  ;;  %s2223_s27 = scalar_lea.sflag [#allocation12], %s355_s30  ;;  %s2221_s25 = int_to_ptr.vmem [resolvable:$true] %s366_s25 }
  0x2c   : > { %p1841_p2 = pneg %p2217_p13 }
  0x2f   : > { %s2214_s13 = scalar_lea.hbm %s2536_s5, %s2519_s17  ;;  %s1844_s23 = scalar_lea.hbm %s2536_s5, 4096 }
  0x30   : > { %s1839_s11 = scalar_lea.hbm %s2214_s13, 2048  ;;  %p1845_p9 = scmp.lt.s32.totalorder %s2214_s13, %s2536_s5 }
  0x31   : > { %p1840_p0 = scmp.ne.s32.totalorder %s2214_s13, %s1839_s11  ;;  %p1846_p10 = scmp.lt.s32.totalorder %s1844_s23, %s1839_s11 }
  0x33   : > { %p1842_p5 = pnand %p1841_p2, %p1840_p0  ;;  %p1847_p12 = por %p1846_p10, %p1845_p9 }
  0x35   : > { %p1843_p8 = pneg %p1842_p5 }
  0x37   : > { %p1848_p3 = pnand %p1847_p12, %p1843_p8 }
  0x39   : > { %1851 = shalt.err (!%p1848_p3)
}
  0x3a   : > { %s1852_s30 = scalar_lea.vmem %s2221_s25, 2048  ;;  %s2065_s18 = smov [#allocation11]  }
  0x3b   : > { %p1853_p1 = scmp.ne.s32.totalorder %s2221_s25, %s1852_s30  ;;  %s1857_s24 = sshll.u32 %s2065_s18, 4  ;;  %s1858_s24 = int_to_ptr.vmem [resolvable:$false] %s1857_s24 }
  0x3c   : > { %s1859_s28 = scalar_lea.vmem %s1858_s24, 4096  ;;  %p1860_p7 = scmp.lt.s32.totalorder %s2221_s25, %s1858_s24 }
  0x3d   : > { %p1855_p0 = pnand %p1853_p1, %p1841_p2  ;;  %p1861_p11 = scmp.lt.s32.totalorder %s1859_s28, %s1852_s30 }
  0x3f   : > { %p1856_p5 = pneg %p1855_p0  ;;  %p1862_p4 = por %p1861_p11, %p1860_p7 }
  0x41   : > { %p1863_p9 = pnand %p1862_p4, %p1856_p5 }
  0x43   : > { %1866 = shalt.err (!%p1863_p9)
}
  0x44   : > { %s2066_s2 = smov 128   ;;  %s2067_s17 = smov 8  }
  0x45   : > { %1693 = dma.hbm_to_vmem [thread:$0]  (!%p2217_p13), %s2214_s13, 2048, %s2221_s25, %s2223_s27, %s2066_s2, %s2066_s2, %s2067_s17  }
  0x46   : > { %s2538_s11 = sshll.u32 %s2062_s16, 11  ;;  %s380_s28 = scalar_lea.vmem [#allocation13], %s2206_s12 }
  0x47   : > { %s2255_s24 = scalar_lea.hbm %s2514_s6, %s2538_s11  ;;  %s2258_s30 = sshll.u32 %s380_s28, 4  ;;  %s2285_s30 = int_to_ptr.vmem [resolvable:$true] %s2258_s30 }
  0x48   : > { %s2068_s5 = smov [#allocation3]   ;;  %p2539_p3 = pneg %p2169_p6 }
  0x49   : > { %s294_s15 = sshll.u32 %s2068_s5, 4  ;;  %s295_s15 = int_to_ptr.vmem [resolvable:$true] %s294_s15 }
  0x4a   : > { %s1878_s22 = scalar_lea.vmem %s295_s15, 256  ;;  %p1886_p11 = scmp.lt.s32.totalorder %s295_s15, %s295_s15 }
  0x4b   : > { %p1879_p1 = scmp.ne.s32.totalorder %s295_s15, %s1878_s22  ;;  %p1887_p8 = scmp.lt.s32.totalorder %s1878_s22, %s1878_s22 }
  0x4d   : > { %p1881_p4 = pnand %p1879_p1, %p2539_p3  ;;  %p1888_p10 = por %p1887_p8, %p1886_p11 }
  0x4f   : > { %p1882_p7 = pneg %p1881_p4 }
  0x51   : > { %p1889_p12 = pnand %p1888_p10, %p1882_p7 }
  0x53   : > { %1892 = shalt.err (!%p1889_p12)
}
  0x54   : > { %s2069_s16 = smov 64   ;;  %s2070_s12 = smov 4  }
  0x55   : > { %1677 = dma.hbm_to_vmem [thread:$0]  (!%p2169_p6), %s2509_s1, 256, %s295_s15, [#allocation4], %s2069_s16, %s2069_s16, %s2070_s12  }
  0x56   : > { %s2071_s25 = smov [#allocation9]   ;;  %p2540_p5 = pmov %p2539_p3 }
  0x57   : > { %s319_s2 = sshll.u32 %s2071_s25, 4  ;;  %s320_s2 = int_to_ptr.vmem [resolvable:$true] %s319_s2 }
  0x58   : > { %s1904_s17 = scalar_lea.vmem %s320_s2, 16  ;;  %s1911_s22 = scalar_lea.vmem %s320_s2, 32 }
  0x59   : > { %p1905_p0 = scmp.ne.s32.totalorder %s320_s2, %s1904_s17  ;;  %p1912_p3 = scmp.lt.s32.totalorder %s320_s2, %s320_s2 }
  0x5a   : > { %p1913_p4 = scmp.lt.s32.totalorder %s1911_s22, %s1904_s17 }
  0x5b   : > { %p1907_p9 = pnand %p1905_p0, %p2540_p5 }
  0x5c   : > { %p1914_p7 = por %p1913_p4, %p1912_p3 }
  0x5d   : > { %p1908_p1 = pneg %p1907_p9 }
  0x5f   : > { %p1915_p11 = pnand %p1914_p7, %p1908_p1 }
  0x61   : > { %1918 = shalt.err (!%p1915_p11)
}
  0x62   : > { %1683 = dma.hbm_to_vmem [thread:$0]  (!%p2169_p6), %s2511_s3, 16, %s320_s2, [#allocation8]  }
  0x63   : > { %s2072_s15 = smov [#allocation10]   ;;  %s2073_s5 = smov [#allocation14]  }
  0x64   : > { %1686 = dma.hbm_to_smem (!%p2169_p6), %s2512_s4, 16, %s2072_s15, [#allocation6]  }
  0x65   : > { %s338_s13 = sshll.u32 %s2073_s5, 4  ;;  %p2541_p10 = pmov %p2540_p5  ;;  %s339_s13 = int_to_ptr.vmem [resolvable:$true] %s338_s13 }
  0x66   : > { %s1941_s25 = scalar_lea.vmem %s339_s13, 1024  ;;  %p1949_p5 = scmp.lt.s32.totalorder %s339_s13, %s339_s13 }
  0x67   : > { %p1942_p8 = scmp.ne.s32.totalorder %s339_s13, %s1941_s25  ;;  %p1950_p9 = scmp.lt.s32.totalorder %s1941_s25, %s1941_s25 }
  0x69   : > { %p1944_p12 = pnand %p1942_p8, %p2541_p10  ;;  %p1951_p1 = por %p1950_p9, %p1949_p5 }
  0x6b   : > { %p1945_p0 = pneg %p1944_p12 }
  0x6d   : > { %p1952_p3 = pnand %p1951_p1, %p1945_p0 }
  0x6f   : > { %1955 = shalt.err (!%p1952_p3)
}
  0x70   : > { %1689 = dma.hbm_to_vmem [thread:$0]  (!%p2169_p6), %s2516_s8, 1024, %s339_s13, [#allocation15], %s2069_s16, %s2069_s16, %s2070_s12  }
  0x71   : > { %s1956_s22 = scalar_lea.hbm %s2255_s24, 2048  ;;  %s1961_s21 = scalar_lea.hbm %s2514_s6, 4096 }
  0x72   : > { %p1957_p4 = scmp.ne.s32.totalorder %s2255_s24, %s1956_s22  ;;  %p1962_p8 = scmp.lt.s32.totalorder %s2255_s24, %s2514_s6 }
  0x73   : > { %p1963_p10 = scmp.lt.s32.totalorder %s1961_s21, %s1956_s22 }
  0x74   : > { %p1959_p7 = pnand %p1957_p4, %p1841_p2 }
  0x75   : > { %p1964_p12 = por %p1963_p10, %p1962_p8 }
  0x76   : > { %p1960_p11 = pneg %p1959_p7 }
  0x78   : > { %p1965_p0 = pnand %p1964_p12, %p1960_p11 }
  0x7a   : > { %1968 = shalt.err (!%p1965_p0)
}
  0x7b   : > { %s1969_s28 = scalar_lea.vmem %s2285_s30, 2048  ;;  %s2074_s5 = smov [#allocation13]  }
  0x7c   : > { %p1970_p6 = scmp.ne.s32.totalorder %s2285_s30, %s1969_s28  ;;  %s1974_s13 = sshll.u32 %s2074_s5, 4  ;;  %s1975_s13 = int_to_ptr.vmem [resolvable:$false] %s1974_s13 }
  0x7d   : > { %s1976_s25 = scalar_lea.vmem %s1975_s13, 4096  ;;  %p1977_p1 = scmp.lt.s32.totalorder %s2285_s30, %s1975_s13 }
  0x7e   : > { %p1972_p5 = pnand %p1970_p6, %p1841_p2  ;;  %p1978_p3 = scmp.lt.s32.totalorder %s1976_s25, %s1969_s28 }
  0x80   : > { %p1973_p9 = pneg %p1972_p5  ;;  %p1979_p4 = por %p1978_p3, %p1977_p1 }
  0x82   : > { %p1980_p7 = pnand %p1979_p4, %p1973_p9 }
  0x84   : > { %1983 = shalt.err (!%p1980_p7)
}
  0x85   : > { %1696 = dma.hbm_to_vmem [thread:$0]  (!%p2217_p13), %s2255_s24, 2048, %s2285_s30, %s2223_s27, %s2069_s16, %s2069_s16, %s2070_s12  }
  0x86   : > { %p2542_p2 = scmp.ne.s32.totalorder %s2530_s20, 0 }
  0x87   : > { %p2543_p11 = scmp.eq.s32.totalorder (!%p2542_p2), %s2155_s19, 0 }
  0x88   : > { %407 = sbr.rel (%p2542_p2) target bundleno = 1376 (0x560), region = 60 }
  0x8d   : > { %2025 = dma.done.wait (%p2543_p11), [#allocation4], 256   ;;  %p2544_p8 = pmov %p2543_p11 }
  0x8f   : > { %2027 = vsyncadd (%p2544_p8), [#allocation4], 4294967040  ;;  %p2545_p10 = pmov %p2544_p8 }
  0x90   : > { %p2546_p12 = pmov %p2544_p8 }
  0x91   : > { %2029 = dma.done.wait (%p2545_p10), [#allocation8], 80  }
  0x92   : > { %2031 = vsyncadd (%p2546_p12), [#allocation8], 4294967216  ;;  %p2547_p0 = pmov %p2544_p8 }
  0x94   : > { %2033 = dma.done.wait (%p2547_p0), [#allocation6], 16   ;;  %p2548_p13 = pmov %p2547_p0 }
  0x95   : > { %s425_s20 = sand.u32 1, %s2155_s19   ;;  %s427_s26 = sand.u32 1, %s2054_s14  }
  0x96   : > { %2035 = vsyncadd (%p2548_p13), [#allocation6], 4294967280  ;;  %s1502_s27 = sshll.u32 %s427_s26, 7  ;;  %s426_s24 = scalar_lea.sflag [#allocation12], %s425_s20 }
  0x97   : > { %s2340_s30 = scalar_lea.vmem [#allocation11], %s1502_s27  ;;  %p2549_p6 = scmp.ne.s32.totalorder %s2535_s29, 0 }
  0x99   : > { %2037 = dma.done.wait (%p2549_p6), %s426_s24, 4096  }
  0x9a   : > { %2039 = vsyncadd (%p2549_p6), %s426_s24, 4294963200  ;;  %s2346_s16 = scalar_lea.vmem [#allocation13], %s1502_s27  ;;  %p2550_p5 = pmov %p2547_p0 }
  0x9b   : > { %p2551_p9 = pmov %p2547_p0 }
  0x9c   : > { %2041 = dma.done.wait (%p2550_p5), [#allocation15], 1024  }
  0x9d   : > { %2043 = vsyncadd (%p2551_p9), [#allocation15], 4294966272 }
  0x9e   : > { %447 = sfence }
  0x9f   : > { %p485_p1 = scmp.lt.s32.totalorder %s2155_s19, 1  ;;  %p2552_p3 = scmp.ne.s32.totalorder %s2155_s19, 0 }
  0xa1   : > { %s486_s12 = scalar_select %p485_p1, %s2155_s19, 1 }
  0xa2   : > { %494 = sbr.rel (%p2552_p3) target bundleno = 374 (0x176), region = 92 }
  0xa3   : > { %s1565_s2 = sshll.u32 %s486_s12, 4 }
  0xa4   : > { %s2357_s11 = scalar_lea.vmem %s2515_s7, %s1565_s2 }
  0xa7   : > { %v499_v0 = vld [vmem:[#allocation7] sm:$0xf]  ;;  %vm524_vm0 = vcmask 1043456   ;;  %v1755_v1 = vld [vmem:[%s2508_s0] sm:$0xff]   ;;  %vm517_vm1 = vcmask 64512   ;;  %v1756_v3 = vld [vmem:[%s2508_s0 + $0x8] sm:$0xff]  }
  0xa8   : > { %1645 = vmatprep.subr.msk.bf16.mxu0 %vm524_vm0, %v499_v0  ;;  %v526_v2 = vsel %vm524_vm0, %v499_v0, 0  ;;  %1613 = vmatprep.mubr.msk.bf16.mxu0 %vm517_vm1, %v1755_v1  ;;  %v1508_v4 = vld [vmem:[#allocation9] ss:$0 sm:$0xff] }
  0xa9   : > { %1612 = vmatpush3.bf16.msra.mxu0 %v526_v2 }
  0xac   : > { %1614 = vmatmul.mubr.msk.bf16.vlgmr.msra.gmra.mxu0 %vm517_vm1, %v1756_v3 }
 0x16c   : > { %v1615_v5 = vpop.f32.mrf.mxu0 }
 0x16d   : > { %v571_v6 = vadd.f32 %v1615_v5, %v1508_v4 }
 0x16e   : > { %v562_v7 = vpop.f32.mrf.mxu0 }
 0x16f   : > { %579 = vst [vmem:[#allocation2 + $0x18] sm:$0xff] %v571_v6  ;;  %v563_v8 = vadd.f32 %v1508_v4, %v562_v7 }
 0x170   : > { %v1616_v9 = vpop.f32.mrf.mxu0 }
 0x171   : > { %577 = vst [vmem:[#allocation2 + $0x10] sm:$0xff] %v563_v8  ;;  %v574_v10 = vadd.f32 %v1616_v9, %v1508_v4 }
 0x172   : > { %v565_v11 = vpop.f32.mrf.mxu0 }
 0x173   : > { %580 = vst [vmem:[#allocation2 + $0x8] sm:$0xff] %v574_v10  ;;  %v566_v12 = vadd.f32 %v1508_v4, %v565_v11 }
 0x175   : > { %578 = vst [vmem:[#allocation2] sm:$0xff] %v566_v12 }
 0x176 PF: > { %v2367_v13 = vld [vmem:[#allocation2 + $0x18] sm:$0xff]  ;;  %vm605_vm2 = vcmask 261120   ;;  %v1757_v19 = vld [vmem:[#allocation3] sm:$0xff]   ;;  %v1759_v20 = vld [vmem:[%s2340_s30 + $0x74] ss:$8 sps:$4 sm:$0xff]   ;;  %v2075_v37 = vmov 0   ;;  %v821_v5 = vlaneseq }
 0x177   : > { %1621 = vmatprep.mubr.msk.bf16.mxu0 %vm605_vm2, %v1757_v19  ;;  %v1761_v21 = vld [vmem:[%s2340_s30 + $0x70] ss:$8 sps:$4 sm:$0xff]   ;;  %v1762_v22 = vld [vmem:[%s2340_s30 + $0x64] ss:$8 sps:$4 sm:$0xff]   ;;  %768 = vmatprep.subr.bf16.mxu1 %v1759_v20  ;;  %v1764_v24 = vld [vmem:[%s2340_s30 + $0x60] ss:$8 sps:$4 sm:$0xff]  }
 0x178   : > { %v2371_v15 = vld [vmem:[#allocation2 + $0x10] sm:$0xff]  ;;  %v1758_v23 = vld [vmem:[#allocation3 + $0x8] sm:$0xff]   ;;  %769 = vmatpush1.bf16.msra.mxu1 %v1761_v21  ;;  %v1768_v27 = vld [vmem:[%s2340_s30 + $0x44] ss:$8 sps:$4 sm:$0xff]   ;;  %800 = vmatprep.mubr.bf16.mxu1 %v2075_v37  ;;  %s585_s18 = sld [smem:[#allocation10 + %s2155_s19]]  ;;  %v2418_v6 = vshrl.u32 %v821_v5, 7 }
 0x179   : > { %770 = vmatprep.subr.bf16.mxu1 %v1762_v22  ;;  %v1765_v25 = vld [vmem:[%s2340_s30 + $0x54] ss:$8 sps:$4 sm:$0xff]   ;;  %v1767_v26 = vld [vmem:[%s2340_s30 + $0x50] ss:$8 sps:$4 sm:$0xff]   ;;  %v1770_v28 = vld [vmem:[%s2340_s30 + $0x40] ss:$8 sps:$4 sm:$0xff]  }
 0x17a   : > { %v2369_v14 = vld [vmem:[#allocation2 + $0x8] sm:$0xff]  ;;  %v1774_v31 = vld [vmem:[%s2340_s30 + $0x24] ss:$8 sps:$4 sm:$0xff]   ;;  %v1776_v32 = vld [vmem:[%s2340_s30 + $0x20] ss:$8 sps:$4 sm:$0xff]   ;;  %v2421_v7 = vsub.s32 0, %v2418_v6 }
 0x17b   : > { %v594_v16 = vpack.c.bf16 %v2369_v14, %v2367_v13  ;;  %v1771_v29 = vld [vmem:[%s2340_s30 + $0x34] ss:$8 sps:$4 sm:$0xff]   ;;  %v1773_v30 = vld [vmem:[%s2340_s30 + $0x30] ss:$8 sps:$4 sm:$0xff]   ;;  %v1780_v35 = vld [vmem:[%s2340_s30 + $0x4] ss:$8 sps:$4 sm:$0xff]  }
 0x17c   : > { %v2375_v17 = vld [vmem:[#allocation2] sm:$0xff]  ;;  %771 = vmatpush1.bf16.msra.mxu1 %v1764_v24  ;;  %v1777_v33 = vld [vmem:[%s2340_s30 + $0x14] ss:$8 sps:$4 sm:$0xff]   ;;  %v1789_v59 = vld [vmem:[%s2346_s16 + $0x60] sm:$0xff]   ;;  %p1549_p4 = scmp.ne.s32.totalorder %s2155_s19, 1 }
 0x17d   : > { %v593_v18 = vpack.c.bf16 %v2375_v17, %v2371_v15  ;;  %1617 = vmatprep.subr.bf16.mxu0 %v594_v16  ;;  %772 = vmatprep.subr.bf16.mxu1 %v1765_v25  ;;  %v1779_v34 = vld [vmem:[%s2340_s30 + $0x10] ss:$8 sps:$4 sm:$0xff]   ;;  %v1782_v36 = vld [vmem:[%s2340_s30] ss:$8 sps:$4 sm:$0xff]  }
 0x17e   : > { %1618 = vmatpush3.bf16.msra.mxu0 %v594_v16  ;;  %s586_s28 = sadd.f32 1.0, %s585_s18  ;;  %v1783_v53 = vld [vmem:[%s2346_s16 + $0x78] sm:$0xff]   ;;  %v1785_v55 = vld [vmem:[%s2346_s16 + $0x70] sm:$0xff]   ;;  %v1787_v57 = vld [vmem:[%s2346_s16 + $0x68] sm:$0xff]  }
 0x17f   : > { %1619 = vmatprep.subr.bf16.mxu0 %v593_v18  ;;  %v1784_v54 = vld [vmem:[%s2346_s16 + $0x38] sm:$0xff]   ;;  %v1786_v56 = vld [vmem:[%s2346_s16 + $0x30] sm:$0xff]   ;;  %v1788_v58 = vld [vmem:[%s2346_s16 + $0x28] sm:$0xff]  }
 0x180   : > { %773 = vmatpush1.bf16.msra.mxu1 %v1767_v26  ;;  %v661_v39 = vstv %s586_s28  ;;  %v1790_v60 = vld [vmem:[%s2346_s16 + $0x20] sm:$0xff]   ;;  %v1791_v61 = vld [vmem:[%s2346_s16 + $0x58] sm:$0xff]   ;;  %v1793_v63 = vld [vmem:[%s2346_s16 + $0x50] sm:$0xff]  }
 0x181   : > { %774 = vmatprep.subr.bf16.mxu1 %v1768_v27  ;;  %v662_v41 = vmul.f32 %v661_v39, %v2371_v15  ;;  %v663_v42 = vmul.f32 %v661_v39, %v2375_v17  ;;  %v665_v47 = vmul.f32 %v661_v39, %v2369_v14  ;;  %v664_v49 = vmul.f32 %v661_v39, %v2367_v13  ;;  %v1792_v62 = vld [vmem:[%s2346_s16 + $0x18] sm:$0xff]   ;;  %v1794_v0 = vld [vmem:[%s2346_s16 + $0x10] sm:$0xff]   ;;  %v1795_v1 = vld [vmem:[%s2346_s16 + $0x48] sm:$0xff]  }
 0x182   : > { %1620 = vmatpush3.bf16.msra.mxu0 %v593_v18  ;;  %v1796_v2 = vld [vmem:[%s2346_s16 + $0x8] sm:$0xff]   ;;  %v1797_v3 = vld [vmem:[%s2346_s16 + $0x40] sm:$0xff]  }
 0x183   : > { %1573 = vmatprep.subr.bf16.mxu0 %v1783_v53  ;;  %v1798_v4 = vld [vmem:[%s2346_s16] sm:$0xff]  }
 0x184   : > { %775 = vmatpush1.bf16.msra.mxu1 %v1770_v28 }
 0x185   : > { %1622 = vmatmul.mubr.msk.bf16.vlgmr.msra.gmra.mxu0 %vm605_vm2, %v1758_v23  ;;  %776 = vmatprep.subr.bf16.mxu1 %v1771_v29 }
 0x186   : > { %1574 = vmatpush3.bf16.msra.mxu0 %v1784_v54 }
 0x187   : > { %1575 = vmatprep.subr.bf16.mxu0 %v1785_v55 }
 0x188   : > { %777 = vmatpush1.bf16.msra.mxu1 %v1773_v30 }
 0x189   : > { %778 = vmatprep.subr.bf16.mxu1 %v1774_v31 }
 0x18a   : > { %1576 = vmatpush3.bf16.msra.mxu0 %v1786_v56 }
 0x18b   : > { %1577 = vmatprep.subr.bf16.mxu0 %v1787_v57 }
 0x18c   : > { %779 = vmatpush1.bf16.msra.mxu1 %v1776_v32 }
 0x18d   : > { %780 = vmatprep.subr.bf16.mxu1 %v1777_v33 }
 0x18e   : > { %1578 = vmatpush3.bf16.msra.mxu0 %v1788_v58 }
 0x18f   : > { %1579 = vmatprep.subr.bf16.mxu0 %v1789_v59 }
 0x190   : > { %781 = vmatpush1.bf16.msra.mxu1 %v1779_v34 }
 0x191   : > { %782 = vmatprep.subr.bf16.mxu1 %v1780_v35 }
 0x192   : > { %1580 = vmatpush3.bf16.msra.mxu0 %v1790_v60 }
 0x193   : > { %1581 = vmatprep.subr.bf16.mxu0 %v1791_v61 }
 0x194   : > { %783 = vmatpush1.bf16.msra.mxu1 %v1782_v36 }
 0x196   : > { %1582 = vmatpush3.bf16.msra.mxu0 %v1792_v62 }
 0x197   : > { %1583 = vmatprep.subr.bf16.mxu0 %v1793_v63 }
 0x19a   : > { %1584 = vmatpush3.bf16.msra.mxu0 %v1794_v0 }
 0x19b   : > { %1585 = vmatprep.subr.bf16.mxu0 %v1795_v1 }
 0x19e   : > { %1586 = vmatpush3.bf16.msra.mxu0 %v1796_v2 }
 0x19f   : > { %1587 = vmatprep.subr.bf16.mxu0 %v1797_v3 }
 0x1a2   : > { %1588 = vmatpush3.bf16.msra.mxu0 %v1798_v4 }
 0x245   : > { %v1623_v38 = vpop.f32.mrf.mxu0 }
 0x246   : > { %v668_v51 = vadd.f32 %v1623_v38, %v664_v49 }
 0x247   : > { %v646_v40 = vpop.f32.mrf.mxu0 }
 0x248   : > { %v666_v45 = vadd.f32 %v662_v41, %v646_v40 }
 0x249   : > { %v1624_v43 = vpop.f32.mrf.mxu0 }
 0x24a   : > { %v669_v50 = vadd.f32 %v1624_v43, %v665_v47 }
 0x24b   : > { %v649_v44 = vpop.f32.mrf.mxu0 }
 0x24c   : > { %v667_v46 = vadd.f32 %v663_v42, %v649_v44  ;;  %v671_v52 = vpack.c.bf16 %v669_v50, %v668_v51 }
 0x24e   : > { %v670_v48 = vpack.c.bf16 %v667_v46, %v666_v45 }
 0x250   : > { %801 = vmatmul.mubr.bf16.vlgmr.msra.gmra.mxu1 %v670_v48 }
 0x251   : > { %810 = vmatprep.mubr.bf16.mxu1 %v2075_v37 }
 0x258   : > { %811 = vmatmul.mubr.bf16.gmra.mxu1 %v671_v52 }
 0x310   : > { %v2423_v8 = vpop.f32.mrf.mxu1 }
 0x311   : > { %v824_v9 = vrot.slane %v2423_v8, %v2421_v7 }
 0x312   : > { %v2427_v10 = vpop.f32.mrf.mxu1 }
 0x313   : > { %v828_v11 = vrot.slane %v2427_v10, %v2421_v7  ;;  %v829_v18 = vsub.f32 %v2423_v8, %v824_v9 }
 0x314   : > { %v2431_v12 = vpop.f32.mrf.mxu1 }
 0x315   : > { %v831_v16 = vsub.f32 %v2431_v12, %v824_v9  ;;  %v830_v22 = vsub.f32 %v2427_v10, %v828_v11  ;;  %v855_v25 = vmul.f32 %v829_v18, %v829_v18 }
 0x316   : > { %v2435_v19 = vpop.f32.mrf.mxu1 }
 0x317   : > { %v832_v20 = vsub.f32 %v2435_v19, %v828_v11  ;;  %v857_v21 = vmul.f32 %v831_v16, %v831_v16  ;;  %v837_v28 = vadd.f32 %v831_v16, %v829_v18  ;;  %v856_v32 = vmul.f32 %v830_v22, %v830_v22 }
 0x318   : > { %v2439_v23 = vpop.f32.mrf.mxu1 }
 0x319   : > { %v833_v24 = vsub.f32 %v2439_v23, %v824_v9  ;;  %v858_v26 = vmul.f32 %v832_v20, %v832_v20  ;;  %v863_v31 = vadd.f32 %v857_v21, %v855_v25  ;;  %v846_v34 = vadd.f32 %v832_v20, %v830_v22 }
 0x31a   : > { %v2442_v27 = vpop.f32.mrf.mxu1 }
 0x31b   : > { %v859_v29 = vmul.f32 %v833_v24, %v833_v24  ;;  %v834_v30 = vsub.f32 %v2442_v27, %v828_v11  ;;  %v838_v35 = vadd.f32 %v837_v28, %v833_v24  ;;  %v872_v38 = vadd.f32 %v858_v26, %v856_v32 }
 0x31c   : > { %v2445_v33 = vpop.f32.mrf.mxu1 }
 0x31d   : > { %v860_v36 = vmul.f32 %v834_v30, %v834_v30  ;;  %v835_v37 = vsub.f32 %v2445_v33, %v824_v9  ;;  %v864_v39 = vadd.f32 %v863_v31, %v859_v29  ;;  %v847_v41 = vadd.f32 %v846_v34, %v834_v30 }
 0x31e   : > { %v2448_v40 = vpop.f32.mrf.mxu1 }
 0x31f   : > { %v839_v42 = vadd.f32 %v838_v35, %v835_v37  ;;  %v861_v43 = vmul.f32 %v835_v37, %v835_v37  ;;  %v836_v44 = vsub.f32 %v2448_v40, %v828_v11  ;;  %v873_v45 = vadd.f32 %v872_v38, %v860_v36  ;;  %v2452_v35 = vld [vmem:[%s2357_s11] sm:$0xff] }
 0x321   : > { %v840_v46 = vrot.slane %v839_v42, 4  ;;  %v865_v47 = vadd.f32 %v864_v39, %v861_v43  ;;  %v848_v48 = vadd.f32 %v847_v41, %v836_v44  ;;  %v862_v49 = vmul.f32 %v836_v44, %v836_v44  ;;  %v588_v39 = vld [vmem:[%s2357_s11 + $0x8] sm:$0xff] }
 0x323   : > { %v841_v50 = vadd.f32 %v840_v46, %v839_v42  ;;  %v866_v51 = vrot.slane %v865_v47, 4  ;;  %v849_v52 = vrot.slane %v848_v48, 4  ;;  %v874_v53 = vadd.f32 %v873_v45, %v862_v49 }
 0x325   : > { %v842_v54 = vrot.slane %v841_v50, 2  ;;  %v867_v55 = vadd.f32 %v866_v51, %v865_v47  ;;  %v850_v56 = vadd.f32 %v849_v52, %v848_v48  ;;  %v875_v57 = vrot.slane %v874_v53, 4 }
 0x326   : > { %v927_v47 = vsub.s32 1, %v2418_v6 }
 0x327   : > { %v843_v58 = vadd.f32 %v842_v54, %v841_v50  ;;  %v868_v59 = vrot.slane %v867_v55, 2  ;;  %v851_v60 = vrot.slane %v850_v56, 2  ;;  %v876_v61 = vadd.f32 %v875_v57, %v874_v53 }
 0x329   : > { %v844_v62 = vrot.slane %v843_v58, 1  ;;  %v869_v63 = vadd.f32 %v868_v59, %v867_v55  ;;  %v852_v0 = vadd.f32 %v851_v60, %v850_v56  ;;  %v877_v1 = vrot.slane %v876_v61, 2 }
 0x32b   : > { %v845_v2 = vadd.f32 %v844_v62, %v843_v58  ;;  %v870_v3 = vrot.slane %v869_v63, 1  ;;  %v853_v4 = vrot.slane %v852_v0, 1  ;;  %v878_v5 = vadd.f32 %v877_v1, %v876_v61 }
 0x32d   : > { %v871_v9 = vadd.f32 %v870_v3, %v869_v63  ;;  %v881_v11 = vmul.f32 0.03125, %v845_v2  ;;  %v854_v16 = vadd.f32 %v853_v4, %v852_v0  ;;  %v879_v18 = vrot.slane %v878_v5, 1 }
 0x32f   : > { %v883_v20 = vmul.f32 0.03125, %v871_v9  ;;  %v885_v21 = vmul.f32 %v881_v11, %v881_v11  ;;  %v880_v22 = vadd.f32 %v879_v18, %v878_v5  ;;  %v882_v24 = vmul.f32 0.03125, %v854_v16 }
 0x330   : > { %v891_v37 = vadd.f32 %v881_v11, %v2423_v8 }
 0x331   : > { %v887_v25 = vsub.f32 %v883_v20, %v885_v21  ;;  %v884_v26 = vmul.f32 0.03125, %v880_v22  ;;  %v886_v28 = vmul.f32 %v882_v24, %v882_v24  ;;  %v892_v43 = vadd.f32 %v882_v24, %v2427_v10 }
 0x333   : > { %v889_v29 = vmax.f32 %v887_v25, 0.0  ;;  %v888_v30 = vsub.f32 %v884_v26, %v886_v28 }
 0x335   : > { %v893_v31 = vadd.f32 1e-05, %v889_v29  ;;  %v890_v32 = vmax.f32 %v888_v30, 0.0 }
 0x337   : > { %1799 = vrsqrt.f32 %v893_v31  ;;  %v894_v34 = vadd.f32 1e-05, %v890_v32 }
 0x339   : > { %1801 = vrsqrt.f32 %v894_v34 }
 0x344   : > { %v1800_v36 = vpop.eup %1799 }
 0x345   : > { %v897_v38 = vmul.f32 %v1800_v36, %v2452_v35 }
 0x346   : > { %v1802_v41 = vpop.eup %1801 }
 0x347   : > { %v899_v42 = vmul.f32 %v897_v38, %v891_v37  ;;  %v898_v44 = vmul.f32 %v1802_v41, %v588_v39  ;;  %v912_v46 = vrot.slane %v897_v38, %v2421_v7 }
 0x349   : > { %v903_v45 = vrot.slane %v899_v42, 7  ;;  %v900_v48 = vmul.f32 %v898_v44, %v892_v43  ;;  %v916_v50 = vrot.slane %v898_v44, %v2421_v7  ;;  %v917_v53 = vmul.f32 %v912_v46, %v2423_v8 }
 0x34a   : > { %v919_v54 = vmul.f32 %v912_v46, %v2431_v12  ;;  %v921_v11 = vmul.f32 %v912_v46, %v2439_v23 }
 0x34b   : > { %v907_v49 = vsub.f32 %v2452_v35, %v903_v45  ;;  %v904_v51 = vrot.slane %v900_v48, 7  ;;  %v924_v56 = vmul.f32 %v916_v50, %v2448_v40  ;;  %v918_v60 = vmul.f32 %v916_v50, %v2427_v10 }
 0x34c   : > { %v920_v61 = vmul.f32 %v916_v50, %v2435_v19  ;;  %v922_v62 = vmul.f32 %v916_v50, %v2442_v27  ;;  %v923_v40 = vmul.f32 %v912_v46, %v2445_v33 }
 0x34d   : > { %v928_v52 = vrot.slane %v907_v49, %v927_v47  ;;  %v908_v55 = vsub.f32 %v588_v39, %v904_v51 }
 0x34f   : > { %v933_v57 = vadd.f32 %v928_v52, %v917_v53  ;;  %v935_v58 = vadd.f32 %v928_v52, %v919_v54  ;;  %v932_v59 = vrot.slane %v908_v55, %v927_v47  ;;  %v939_v10 = vadd.f32 %v928_v52, %v923_v40 }
 0x350   : > { %v937_v19 = vadd.f32 %v928_v52, %v921_v11 }
 0x351   : > { %v940_v63 = vadd.f32 %v932_v59, %v924_v56  ;;  %v934_v0 = vadd.f32 %v932_v59, %v918_v60  ;;  %v936_v1 = vadd.f32 %v932_v59, %v920_v61  ;;  %v938_v2 = vadd.f32 %v932_v59, %v922_v62 }
 0x352   : > { %v941_v3 = vmax.f32 %v933_v57, 0.0  ;;  %v943_v8 = vmax.f32 %v935_v58, 0.0  ;;  %v947_v20 = vmax.f32 %v939_v10, 0.0  ;;  %v945_v21 = vmax.f32 %v937_v19, 0.0 }
 0x353   : > { %v948_v4 = vmax.f32 %v940_v63, 0.0  ;;  %v942_v12 = vmax.f32 %v934_v0, 0.0  ;;  %v944_v5 = vmax.f32 %v936_v1, 0.0  ;;  %v946_v9 = vmax.f32 %v938_v2, 0.0 }
 0x354   : > { %v949_v18 = vpack.c.bf16 %v943_v8, %v941_v3  ;;  %v951_v22 = vpack.c.bf16 %v947_v20, %v945_v21  ;;  %v1187_v19 = vsub.s32 3, %v2418_v6 }
 0x355   : > { %v950_v16 = vpack.c.bf16 %v944_v5, %v942_v12  ;;  %v952_v27 = vpack.c.bf16 %v948_v4, %v946_v9  ;;  %v1179_v9 = vsub.s32 2, %v2418_v6 }
 0x357   : > { %1113 = vmatprep.mubr.bf16.mxu0 %v950_v16 }
 0x358   : > { %1114 = vmatmul.mubr.bf16.vlgmr.msra.gmra.mxu0 %v949_v18 }
 0x359   : > { %1121 = vmatprep.mubr.bf16.mxu0 %v952_v27 }
 0x360   : > { %1122 = vmatmul.mubr.bf16.gmra.mxu0 %v951_v22 }
 0x418   : > { %v1589_v24 = vpop.f32.mrf.mxu0 }
 0x41a   : > { %v1590_v25 = vpop.f32.mrf.mxu0 }
 0x41b   : > { %v1591_v26 = vadd.f32 %v1590_v25, %v1589_v24 }
 0x41c   : > { %v1592_v28 = vpop.f32.mrf.mxu0 }
 0x41d   : > { %v1133_v33 = vrot.slane %v1591_v26, %v2421_v7 }
 0x41e   : > { %v1593_v29 = vpop.f32.mrf.mxu0 }
 0x41f   : > { %v1594_v23 = vadd.f32 %v1593_v29, %v1592_v28  ;;  %v1134_v34 = vsub.f32 %v1591_v26, %v1133_v33 }
 0x420   : > { %v1595_v30 = vpop.f32.mrf.mxu0 }
 0x421   : > { %v1135_v31 = vsub.f32 %v1594_v23, %v1133_v33  ;;  %v1147_v43 = vmul.f32 %v1134_v34, %v1134_v34 }
 0x422   : > { %v1596_v32 = vpop.f32.mrf.mxu0 }
 0x423   : > { %v1597_v36 = vadd.f32 %v1596_v32, %v1595_v30  ;;  %v1148_v38 = vmul.f32 %v1135_v31, %v1135_v31  ;;  %v1138_v42 = vadd.f32 %v1135_v31, %v1134_v34 }
 0x424   : > { %v1598_v37 = vpop.f32.mrf.mxu0 }
 0x425   : > { %v1136_v39 = vsub.f32 %v1597_v36, %v1133_v33  ;;  %v1151_v46 = vadd.f32 %v1148_v38, %v1147_v43 }
 0x426   : > { %v1599_v41 = vpop.f32.mrf.mxu0 }
 0x427   : > { %v1149_v44 = vmul.f32 %v1136_v39, %v1136_v39  ;;  %v1600_v45 = vadd.f32 %v1599_v41, %v1598_v37  ;;  %v1139_v47 = vadd.f32 %v1138_v42, %v1136_v39 }
 0x429   : > { %v1137_v48 = vsub.f32 %v1600_v45, %v1133_v33  ;;  %v1152_v49 = vadd.f32 %v1151_v46, %v1149_v44 }
 0x42b   : > { %v1140_v50 = vadd.f32 %v1139_v47, %v1137_v48  ;;  %v1150_v7 = vmul.f32 %v1137_v48, %v1137_v48 }
 0x42d   : > { %v1141_v51 = vrot.slane %v1140_v50, 4  ;;  %v1153_v52 = vadd.f32 %v1152_v49, %v1150_v7 }
 0x42f   : > { %v1142_v53 = vadd.f32 %v1141_v51, %v1140_v50  ;;  %v1154_v54 = vrot.slane %v1153_v52, 4 }
 0x431   : > { %v1143_v55 = vrot.slane %v1142_v53, 2  ;;  %v1155_v56 = vadd.f32 %v1154_v54, %v1153_v52 }
 0x433   : > { %v1144_v57 = vadd.f32 %v1143_v55, %v1142_v53  ;;  %v1156_v58 = vrot.slane %v1155_v56, 2 }
 0x435   : > { %v1145_v59 = vrot.slane %v1144_v57, 1  ;;  %v1157_v60 = vadd.f32 %v1156_v58, %v1155_v56 }
 0x437   : > { %v1146_v61 = vadd.f32 %v1145_v59, %v1144_v57  ;;  %v1158_v62 = vrot.slane %v1157_v60, 1 }
 0x439   : > { %v1159_v63 = vadd.f32 %v1158_v62, %v1157_v60  ;;  %v1160_v0 = vmul.f32 0.03125, %v1146_v61 }
 0x43b   : > { %v1161_v1 = vmul.f32 0.03125, %v1159_v63  ;;  %v1162_v2 = vmul.f32 %v1160_v0, %v1160_v0  ;;  %v1165_v40 = vadd.f32 %v1591_v26, %v1160_v0 }
 0x43d   : > { %v1163_v3 = vsub.f32 %v1161_v1, %v1162_v2 }
 0x43f   : > { %v1164_v8 = vmax.f32 %v1163_v3, 0.0 }
 0x441   : > { %v1166_v4 = vadd.f32 1e-05, %v1164_v8 }
 0x443   : > { %1803 = vrsqrt.f32 %v1166_v4 }
 0x450   : > { %v1804_v12 = vpop.eup %1803 }
 0x451   : > { %v1168_v5 = vmul.f32 %v1804_v12, %v2452_v35 }
 0x453   : > { %v1170_v11 = vrot.slane %v1168_v5, 2  ;;  %v1180_v10 = vrot.slane %v1168_v5, %v1179_v9 }
 0x455   : > { %v1172_v16 = vmul.f32 %v1170_v11, %v1165_v40  ;;  %v1181_v20 = vmul.f32 %v1591_v26, %v1180_v10  ;;  %v1182_v21 = vmul.f32 %v1594_v23, %v1180_v10  ;;  %v1183_v22 = vmul.f32 %v1597_v36, %v1180_v10 }
 0x456   : > { %v1184_v24 = vmul.f32 %v1600_v45, %v1180_v10 }
 0x457   : > { %v1174_v18 = vrot.slane %v1172_v16, 5 }
 0x459   : > { %v1176_v27 = vsub.f32 %v2452_v35, %v1174_v18 }
 0x45b   : > { %v1188_v25 = vrot.slane %v1176_v27, %v1187_v19 }
 0x45d   : > { %v1189_v28 = vadd.f32 %v1188_v25, %v1181_v20  ;;  %v1190_v29 = vadd.f32 %v1188_v25, %v1182_v21  ;;  %v1191_v33 = vadd.f32 %v1188_v25, %v1183_v22  ;;  %v1192_v30 = vadd.f32 %v1188_v25, %v1184_v24 }
 0x45f   : > { %v1193_v31 = vmax.f32 %v1189_v28, 0.0  ;;  %v1194_v32 = vmax.f32 %v1190_v29, 0.0  ;;  %v1195_v34 = vmax.f32 %v1191_v33, 0.0  ;;  %v1196_v37 = vmax.f32 %v1192_v30, 0.0 }
 0x460   : > { %1208 = sbr.rel (%p1549_p4) target bundleno = 1360 (0x550), region = 96 }
 0x461   : > { %v1197_v38 = vadd.f32 %v1193_v31, %v2371_v15  ;;  %v1198_v39 = vadd.f32 %v1194_v32, %v2375_v17  ;;  %v1199_v6 = vadd.f32 %v1195_v34, %v2367_v13  ;;  %v1200_v35 = vadd.f32 %v1196_v37, %v2369_v14 }
 0x463   : > { %1201 = vst [vmem:[#allocation2 + $0x10] sm:$0xff] %v1197_v38  ;;  %1202 = vst [vmem:[#allocation2] sm:$0xff] %v1198_v39 }
 0x464   : > { %1203 = vst [vmem:[#allocation2 + $0x18] sm:$0xff] %v1199_v6  ;;  %1204 = vst [vmem:[#allocation2 + $0x8] sm:$0xff] %v1200_v35 }
 0x465   : > { %v1805_v26 = vld [vmem:[#allocation14 + $0x38] sm:$0xff]   ;;  %v1806_v23 = vld [vmem:[#allocation14 + $0x30] sm:$0xff]   ;;  %v1807_v36 = vld [vmem:[#allocation14 + $0x28] sm:$0xff]  }
 0x466   : > { %1625 = vmatprep.subr.bf16.mxu0 %v1805_v26  ;;  %v1808_v15 = vld [vmem:[#allocation14 + $0x20] sm:$0xff]   ;;  %v1809_v14 = vld [vmem:[#allocation14 + $0x18] sm:$0xff]   ;;  %v1810_v42 = vld [vmem:[#allocation14 + $0x10] sm:$0xff]  }
 0x467   : > { %1626 = vmatpush3.bf16.msra.mxu0 %v1805_v26  ;;  %v1811_v43 = vld [vmem:[#allocation14 + $0x8] sm:$0xff]   ;;  %v1812_v44 = vld [vmem:[#allocation14] sm:$0xff]  }
 0x468   : > { %1627 = vmatprep.subr.bf16.mxu0 %v1806_v23  ;;  %v1550_v48 = vld [vmem:[%s2517_s9] ss:$0 sm:$0xff] }
 0x46a   : > { %v1209_v17 = vld [vmem:[#allocation2 + $0x10] sm:$0xff]  ;;  %v1210_v13 = vld [vmem:[#allocation2] sm:$0xff] }
 0x46b   : > { %1628 = vmatpush3.bf16.msra.mxu0 %v1806_v23  ;;  %v1213_v41 = vpack.c.bf16 %v1210_v13, %v1209_v17  ;;  %v1211_v45 = vld [vmem:[#allocation2 + $0x18] sm:$0xff]  ;;  %v1212_v46 = vld [vmem:[#allocation2 + $0x8] sm:$0xff] }
 0x46c   : > { %1629 = vmatprep.subr.bf16.mxu0 %v1807_v36  ;;  %v1214_v47 = vpack.c.bf16 %v1212_v46, %v1211_v45 }
 0x46d   : > { %1641 = vmatprep.mubr.bf16.mxu0 %v1213_v41 }
 0x46f   : > { %1630 = vmatpush3.bf16.msra.mxu0 %v1807_v36 }
 0x470   : > { %1631 = vmatprep.subr.bf16.mxu0 %v1808_v15 }
 0x473   : > { %1632 = vmatpush3.bf16.msra.mxu0 %v1808_v15 }
 0x474   : > { %1633 = vmatprep.subr.bf16.mxu0 %v1809_v14 }
 0x477   : > { %1634 = vmatpush3.bf16.msra.mxu0 %v1809_v14 }
 0x478   : > { %1635 = vmatprep.subr.bf16.mxu0 %v1810_v42 }
 0x47b   : > { %1636 = vmatpush3.bf16.msra.mxu0 %v1810_v42 }
 0x47c   : > { %1637 = vmatprep.subr.bf16.mxu0 %v1811_v43 }
 0x47f   : > { %1638 = vmatpush3.bf16.msra.mxu0 %v1811_v43 }
 0x480   : > { %1639 = vmatprep.subr.bf16.mxu0 %v1812_v44 }
 0x483   : > { %1640 = vmatpush3.bf16.msra.mxu0 %v1812_v44 }
 0x486   : > { %1642 = vmatmul.mubr.bf16.vlgmr.msra.gmra.mxu0 %v1214_v47 }
 0x546   : > { %v1643_v49 = vpop.f32.mrf.mxu0 }
 0x547   : > { %v1329_v50 = vadd.f32 %v1643_v49, %v1550_v48 }
 0x548   : > { %v1320_v7 = vpop.f32.mrf.mxu0 }
 0x549   : > { %1337 = vst [vmem:[#allocation16 + $0x10] sm:$0xff] %v1329_v50  ;;  %v1321_v51 = vadd.f32 %v1550_v48, %v1320_v7 }
 0x54a   : > { %v1644_v52 = vpop.f32.mrf.mxu0 }
 0x54b   : > { %1335 = vst [vmem:[#allocation16] sm:$0xff] %v1321_v51  ;;  %v1332_v53 = vadd.f32 %v1644_v52, %v1550_v48 }
 0x54c   : > { %v1323_v54 = vpop.f32.mrf.mxu0 }
 0x54d   : > { %1338 = vst [vmem:[#allocation16 + $0x18] sm:$0xff] %v1332_v53  ;;  %v1324_v55 = vadd.f32 %v1550_v48, %v1323_v54 }
 0x54f   : > { %1336 = vst [vmem:[#allocation16 + $0x8] sm:$0xff] %v1324_v55 }
 0x550 PF: > { %p1708_p7 = scmp.eq.s32.totalorder %s2155_s19, 1  ;;  %s2076_s25 = smov [#allocation16]  }
 0x551   : > { %s1345_s20 = sshll.u32 %s2076_s25, 4  ;;  %s1346_s20 = int_to_ptr.vmem [resolvable:$true] %s1345_s20 }
 0x552   : > { %s1984_s26 = scalar_lea.vmem %s1346_s20, 512  ;;  %p1991_p10 = scmp.lt.s32.totalorder %s1346_s20, %s1346_s20 }
 0x553   : > { %p1985_p2 = scmp.ne.s32.totalorder %s1346_s20, %s1984_s26  ;;  %p1992_p12 = scmp.lt.s32.totalorder %s1984_s26, %s1984_s26 }
 0x555   : > { %p1986_p11 = pnand %p1985_p2, %p1708_p7  ;;  %p1993_p0 = por %p1992_p12, %p1991_p10 }
 0x557   : > { %p1987_p8 = pneg %p1986_p11 }
 0x559   : > { %p1994_p13 = pnand %p1993_p0, %p1987_p8 }
 0x55b   : > { %1997 = shalt.err (!%p1994_p13)
}
 0x55c   : > { %s2077_s27 = smov 128   ;;  %s2078_s24 = smov 8  }
 0x55d   : > { %1671 = dma.vmem_to_hbm [thread:$0]  (%p1708_p7), %s1346_s20, 512, %s2518_s10, [#allocation5], %s2077_s27, %s2077_s27, %s2078_s24  }
 0x55e   : > { %2045 = dma.done.wait (%p1708_p7), [#allocation5], 512  }
 0x55f   : > { %2047 = vsyncadd (%p1708_p7), [#allocation5], 4294966784 }
 0x560 PF: > { %s2553_s16 = sld [smem:[#allocation24_spill]]  ;;  %s2556_s13 = smov %s2054_s14 }
 0x561   : > { %s2554_s12 = sld [smem:[#allocation23_spill]] }
 0x562   : > { %s2555_s15 = sld [smem:[#allocation25_spill]] }
 0x566   : > { %p25_p6 = scmp.ge.s32.totalorder %s2553_s16, 4  }
 0x567   : > { %s2557_s14 = smov %s2554_s12 }
 0x568   :  { %27 = sbr.rel (!%p25_p6) target bundleno = 11 (0xb), region = 141 }
 0x56d   :  { %1361 = vsyncpa [#allocation4], 1 }
 0x56e   :  { %1363 = vsyncpa [#allocation4 + $0x1], 1 }
 0x56f   :  { %1364 = vsyncpa [#allocation8], 1 }
 0x570   :  { %1365 = vsyncpa [#allocation12], 1 }
 0x571   :  { %1367 = vsyncpa [#allocation12 + $0x1], 1 }
 0x572   :  { %1368 = vsyncpa [#allocation15], 1 }
 0x573   :  { %1369 = vsyncpa [#allocation5], 1 }
 0x574   :  { %1371 = vsyncpa [#allocation5 + $0x1], 1 }
 0x575   :  { %1372 = vsyncpa [#allocation6], 1 }
 0x576   :  { %1374 = vsyncpa [#allocation6 + $0x1], 1 }

</bundles_post_ra>
